<compile_context>
chip_gen: v5e
topology: v5e:2x2
jax: 0.10.0
libtpu: 0.0.40
codegen_flags: <defaults>
</compile_context>

<pallas_src>
import functools

import jax
import jax.numpy as jnp
from jax.experimental import pallas as pl
from jax.experimental.pallas import tpu as pltpu


# ----------------------------------------------------------------------------
# Tiny excitation MLP on a [C, 1] mean column -> [C, 1] sigmoid gate (f32).
# ----------------------------------------------------------------------------
def _excite(m_col, w1t, b1_row, w2, b2_col):
    """m_col: [C,1] f32; w1t: [C,H]; b1_row: [1,H]; w2: [C,H]; b2_col: [C,1]."""
    # fc_1 + ReLU:  h[1, H] = relu(sum_c m[c] * w1[h, c] + b1[h])
    h = jnp.sum(w1t * m_col, axis=0, keepdims=True) + b1_row          # [1, H]
    h = jnp.maximum(h, 0.0)
    # fc_2 + sigmoid:  s[C, 1] = sigmoid(sum_h w2[c, h] * h[h] + b2[c])
    s = jnp.sum(w2 * h, axis=1, keepdims=True) + b2_col               # [C, 1]
    return jax.nn.sigmoid(s)


# ----------------------------------------------------------------------------
# Fused single-pass kernel: one grid step per batch (slab fits VMEM).
# ----------------------------------------------------------------------------
def _se_fused_kernel(x_ref, w1t_ref, b1_ref, w2_ref, b2_ref, o_ref, *, inv_t):
    """Grid = (B,). x_ref/o_ref: [1, C, T]; weights as in _excite."""
    m = jnp.sum(x_ref[0].astype(jnp.float32), axis=1, keepdims=True) * inv_t
    gate = _excite(m, w1t_ref[...], b1_ref[...], w2_ref[...], b2_ref[...])
    o_ref[0] = (x_ref[0] * gate).astype(o_ref.dtype)


# ----------------------------------------------------------------------------
# Streaming pass 1: running sum over frame chunks + excitation MLP -> gate
# ----------------------------------------------------------------------------
def _se_reduce_kernel(x_ref, w1t_ref, b1_ref, w2_ref, b2_ref, scale_ref,
                      acc_ref, *, inv_t, t_total, t_tile, needs_mask):
    """Grid = (B, nT).

    x_ref    : [1, C, tT]  NCT input chunk (channels on sublanes, frames lanes)
    scale_ref: [1, C, 1]   output gate (f32), written once per batch
    acc_ref  : [C, 1]      VMEM scratch running sum (f32)
    """
    j = pl.program_id(1)

    @pl.when(j == 0)
    def _init():
        acc_ref[...] = jnp.zeros_like(acc_ref)

    x = x_ref[0].astype(jnp.float32)                                  # [C, tT]
    if needs_mask:
        # Last chunk may extend past T: zero out-of-range lanes before summing.
        lane = jax.lax.broadcasted_iota(jnp.int32, x.shape, 1)
        x = jnp.where(lane < (t_total - j * t_tile), x, 0.0)
    acc_ref[...] += jnp.sum(x, axis=1, keepdims=True)                 # [C, 1]

    @pl.when(j == pl.num_programs(1) - 1)
    def _finalize():
        m = acc_ref[...] * inv_t                                      # true mean
        gate = _excite(m, w1t_ref[...], b1_ref[...], w2_ref[...], b2_ref[...])
        scale_ref[0] = gate.astype(scale_ref.dtype)                   # [C, 1]


# ----------------------------------------------------------------------------
# Streaming pass 2: lane-dense rescale  out = x * gate
# ----------------------------------------------------------------------------
def _se_scale_kernel(x_ref, scale_ref, o_ref):
    """Grid = (B, nT); x_ref/o_ref: [1, C, tT], scale_ref: [1, C, 1]."""
    o_ref[0] = (x_ref[0] * scale_ref[0]).astype(o_ref.dtype)


# ----------------------------------------------------------------------------
# Wrapper
# ----------------------------------------------------------------------------
def _choose_t_tile(T, C, itemsize, block_bytes_budget=2 * 1024 * 1024):
    """Frames-axis tile: lane-dense (multiple of 128) and small enough that
    double-buffered in/out [C, tT] blocks fit the default scoped-VMEM limit on
    all of v5e / v6e / v7x.  Prefers an exact divisor of T; otherwise returns a
    non-dividing tile (the kernels mask the final partial chunk)."""
    max_tt = (block_bytes_budget // max(1, C * itemsize)) // 128 * 128
    max_tt = max(128, max_tt)
    if T <= max_tt:
        return T
    for d in range(max_tt, 127, -128):
        if T % d == 0:
            return d
    return max_tt


def se_block_pallas(inputs, w1, b1, w2, b2, *, t_tile=None,
                    fused_slab_bytes=3 * 1024 * 1024):
    """SEBlock forward.

    inputs: [B, C, T] (PyTorch NCT layout — kept as-is, no layout round-trip)
    w1    : [H, C, 1] fc_1 conv1d weight (context=[0]); b1: [H]
    w2    : [C, H, 1] fc_2 conv1d weight;               b2: [C]
    returns [B, C, T]
    """
    B, C, T = inputs.shape
    H = w1.shape[0]
    itemsize = jnp.dtype(inputs.dtype).itemsize

    # Tiny parameter reshapes only (no full-tensor transposes of `inputs`).
    w1_t = jnp.transpose(w1[:, :, 0])      # [C, H]
    w2_m = w2[:, :, 0]                     # [C, H]
    b1_r = b1.reshape(1, H)
    b2_c = b2.reshape(C, 1)

    weight_specs = [
        pl.BlockSpec((C, H), lambda *idx: (0, 0)),
        pl.BlockSpec((1, H), lambda *idx: (0, 0)),
        pl.BlockSpec((C, H), lambda *idx: (0, 0)),
        pl.BlockSpec((C, 1), lambda *idx: (0, 0)),
    ]

    # ---- fused single-pass path: slab fits VMEM -> read x once, write once.
    if t_tile is None and C * T * itemsize <= fused_slab_bytes:
        return pl.pallas_call(
            functools.partial(_se_fused_kernel, inv_t=1.0 / T),
            out_shape=jax.ShapeDtypeStruct((B, C, T), inputs.dtype),
            grid_spec=pltpu.PrefetchScalarGridSpec(
                num_scalar_prefetch=0,
                grid=(B,),
                in_specs=[pl.BlockSpec((1, C, T), lambda b: (b, 0, 0))]
                         + weight_specs,
                out_specs=pl.BlockSpec((1, C, T), lambda b: (b, 0, 0)),
            ),
            compiler_params=pltpu.CompilerParams(
                dimension_semantics=("parallel",),
            ),
        )(inputs, w1_t, b1_r, w2_m, b2_c)

    # ---- streaming two-pass path -----------------------------------------
    if t_tile is None:
        t_tile = _choose_t_tile(T, C, itemsize)
    t_tile = min(t_tile, T)
    assert t_tile == T or t_tile % 128 == 0, (
        "t_tile must be a multiple of 128 or the full frame axis")
    n_t = pl.cdiv(T, t_tile)
    needs_mask = (T % t_tile) != 0

    # pass 1: per-batch gate
    scale = pl.pallas_call(
        functools.partial(_se_reduce_kernel, inv_t=1.0 / T, t_total=T,
                          t_tile=t_tile, needs_mask=needs_mask),
        out_shape=jax.ShapeDtypeStruct((B, C, 1), jnp.float32),
        grid_spec=pltpu.PrefetchScalarGridSpec(
            num_scalar_prefetch=0,
            grid=(B, n_t),
            in_specs=[pl.BlockSpec((1, C, t_tile), lambda b, j: (b, 0, j))]
                     + weight_specs,
            out_specs=pl.BlockSpec((1, C, 1), lambda b, j: (b, 0, 0)),
            scratch_shapes=[pltpu.VMEM((C, 1), jnp.float32)],
        ),
        compiler_params=pltpu.CompilerParams(
            dimension_semantics=("parallel", "arbitrary"),
        ),
    )(inputs, w1_t, b1_r, w2_m, b2_c)

    # pass 2: rescale (fully parallel, lane-dense stores)
    out = pl.pallas_call(
        _se_scale_kernel,
        out_shape=jax.ShapeDtypeStruct((B, C, T), inputs.dtype),
        grid_spec=pltpu.PrefetchScalarGridSpec(
            num_scalar_prefetch=0,
            grid=(B, n_t),
            in_specs=[
                pl.BlockSpec((1, C, t_tile), lambda b, j: (b, 0, j)),
                pl.BlockSpec((1, C, 1), lambda b, j: (b, 0, 0)),
            ],
            out_specs=pl.BlockSpec((1, C, t_tile), lambda b, j: (b, 0, j)),
        ),
        compiler_params=pltpu.CompilerParams(
            dimension_semantics=("parallel", "parallel"),
        ),
    )(inputs, scale)

    return out


def se_block_reference(inputs, w1, b1, w2, b2):
    """Pure-JAX reference mirroring the PyTorch SEBlock forward."""
    m = jnp.mean(inputs, axis=2, keepdims=True)                        # [B, C, 1]
    h = jnp.einsum("hc,bcx->bhx", w1[:, :, 0], m) + b1[None, :, None]  # fc_1
    h = jnp.maximum(h, 0.0)
    s = jnp.einsum("ch,bhx->bcx", w2[:, :, 0], h) + b2[None, :, None]  # fc_2
    scale = jax.nn.sigmoid(s)
    return inputs * scale


if __name__ == "__main__":
    # SEBlock(input_dim=128, ratio=16) -> hidden = 8 ; short utterances.
    B, C = 2, 128
    ratio = 16
    H = C // ratio

    key = jax.random.PRNGKey(0)
    k_x, k_w1, k_b1, k_w2, k_b2, k_x2 = jax.random.split(key, 6)

    w1 = 0.01 * jax.random.normal(k_w1, (H, C, 1), dtype=jnp.float32)
    b1 = 0.01 * jax.random.normal(k_b1, (H,), dtype=jnp.float32)
    w2 = 0.01 * jax.random.normal(k_w2, (C, H, 1), dtype=jnp.float32)
    b2 = 0.01 * jax.random.normal(k_b2, (C,), dtype=jnp.float32)

    # Case 1: fused single-pass path (default for small slabs), T = 512.
    T1 = 512
    x1 = jax.random.normal(k_x, (B, C, T1), dtype=jnp.float32)
    ref1 = se_block_reference(x1, w1, b1, w2, b2)
    out_fused = jax.block_until_ready(se_block_pallas(x1, w1, b1, w2, b2))
    assert out_fused.shape == (B, C, T1)
    assert jnp.allclose(out_fused, ref1, atol=1e-5, rtol=1e-5)

    # Case 2: streaming two-pass path (explicit frame tile, exercises the
    # multi-chunk reduction), same input.
    out_stream = jax.block_until_ready(
        se_block_pallas(x1, w1, b1, w2, b2, t_tile=128))
    assert jnp.allclose(out_stream, ref1, atol=1e-5, rtol=1e-5)

    # Case 3: streaming path with a non-dividing frame tile (masked last chunk).
    T2 = 400
    x2 = jax.random.normal(k_x2, (B, C, T2), dtype=jnp.float32)
    ref2 = se_block_reference(x2, w1, b1, w2, b2)
    out_masked = jax.block_until_ready(
        se_block_pallas(x2, w1, b1, w2, b2, t_tile=128))
    assert out_masked.shape == (B, C, T2)
    assert jnp.allclose(out_masked, ref2, atol=1e-5, rtol=1e-5)

    print("KERNEL_OK")
</pallas_src>

<mosaic_0001>
module attributes {stable_mosaic.version = 11 : i64} {
  func.func @_se_fused_kernel(%arg0: i32, %arg1: memref<1x128x512xf32, #tpu.memory_space<vmem>>, %arg2: memref<128x8xf32, #tpu.memory_space<vmem>>, %arg3: memref<1x8xf32, #tpu.memory_space<vmem>>, %arg4: memref<128x8xf32, #tpu.memory_space<vmem>>, %arg5: memref<128x1xf32, #tpu.memory_space<vmem>>, %arg6: memref<1x128x512xf32, #tpu.memory_space<vmem>>) attributes {dimension_semantics = [#tpu.dimension_semantics<parallel>], iteration_bounds = array<i64: 2>, scalar_prefetch = 0 : i64, scratch_operands = 0 : i64, tpu.core_type = #tpu.core_type<tc>, window_params = [{transform_indices = @transform_0, window_bounds = array<i64: 1, 128, 512>}, {pipeline_mode = #tpu.pipeline_mode<synchronous>, transform_indices = @transform_1, window_bounds = array<i64: 128, 8>}, {pipeline_mode = #tpu.pipeline_mode<synchronous>, transform_indices = @transform_2, window_bounds = array<i64: 1, 8>}, {pipeline_mode = #tpu.pipeline_mode<synchronous>, transform_indices = @transform_3, window_bounds = array<i64: 128, 8>}, {pipeline_mode = #tpu.pipeline_mode<synchronous>, transform_indices = @transform_4, window_bounds = array<i64: 128, 1>}, {transform_indices = @transform_5, window_bounds = array<i64: 1, 128, 512>}]} {
    %c0 = arith.constant 0 : index
    %c0_0 = arith.constant 0 : index
    %c0_1 = arith.constant 0 : index
    %0 = vector.load %arg1[%c0, %c0_0, %c0_1] : memref<1x128x512xf32, #tpu.memory_space<vmem>>, vector<1x128x512xf32>
    %1 = vector.shape_cast %0 : vector<1x128x512xf32> to vector<128x512xf32>
    %cst = arith.constant dense<0.000000e+00> : vector<128xf32>
    %2 = vector.multi_reduction <add>, %1, %cst [1] : vector<128x512xf32> to vector<128xf32>
    %3 = vector.shape_cast %2 : vector<128xf32> to vector<128x1xf32>
    %cst_2 = arith.constant 0.001953125 : f32
    %4 = vector.broadcast %cst_2 : f32 to vector<128x1xf32>
    %5 = arith.mulf %3, %4 : vector<128x1xf32>
    %c0_3 = arith.constant 0 : index
    %c0_4 = arith.constant 0 : index
    %6 = vector.load %arg2[%c0_3, %c0_4] : memref<128x8xf32, #tpu.memory_space<vmem>>, vector<128x8xf32>
    %c0_5 = arith.constant 0 : index
    %c0_6 = arith.constant 0 : index
    %7 = vector.load %arg3[%c0_5, %c0_6] : memref<1x8xf32, #tpu.memory_space<vmem>>, vector<1x8xf32>
    %c0_7 = arith.constant 0 : index
    %c0_8 = arith.constant 0 : index
    %8 = vector.load %arg4[%c0_7, %c0_8] : memref<128x8xf32, #tpu.memory_space<vmem>>, vector<128x8xf32>
    %c0_9 = arith.constant 0 : index
    %c0_10 = arith.constant 0 : index
    %9 = vector.load %arg5[%c0_9, %c0_10] : memref<128x1xf32, #tpu.memory_space<vmem>>, vector<128x1xf32>
    %10 = vector.broadcast %5 : vector<128x1xf32> to vector<128x8xf32>
    %11 = arith.mulf %6, %10 : vector<128x8xf32>
    %cst_11 = arith.constant dense<0.000000e+00> : vector<8xf32>
    %12 = vector.multi_reduction <add>, %11, %cst_11 [0] : vector<128x8xf32> to vector<8xf32>
    %13 = vector.shape_cast %12 : vector<8xf32> to vector<1x8xf32>
    %14 = arith.addf %13, %7 : vector<1x8xf32>
    %cst_12 = arith.constant 0.000000e+00 : f32
    %15 = vector.broadcast %cst_12 : f32 to vector<1x8xf32>
    %16 = arith.maximumf %14, %15 : vector<1x8xf32>
    %17 = vector.broadcast %16 : vector<1x8xf32> to vector<128x8xf32>
    %18 = arith.mulf %8, %17 : vector<128x8xf32>
    %cst_13 = arith.constant dense<0.000000e+00> : vector<128xf32>
    %19 = vector.multi_reduction <add>, %18, %cst_13 [1] : vector<128x8xf32> to vector<128xf32>
    %20 = vector.shape_cast %19 : vector<128xf32> to vector<128x1xf32>
    %21 = arith.addf %20, %9 : vector<128x1xf32>
    %22 = arith.negf %21 : vector<128x1xf32>
    %23 = math.exp %22 : vector<128x1xf32>
    %cst_14 = arith.constant 1.000000e+00 : f32
    %24 = vector.broadcast %cst_14 : f32 to vector<128x1xf32>
    %25 = arith.addf %24, %23 : vector<128x1xf32>
    %26 = arith.divf %24, %25 : vector<128x1xf32>
    %c0_15 = arith.constant 0 : index
    %c0_16 = arith.constant 0 : index
    %c0_17 = arith.constant 0 : index
    %27 = vector.load %arg1[%c0_15, %c0_16, %c0_17] : memref<1x128x512xf32, #tpu.memory_space<vmem>>, vector<1x128x512xf32>
    %28 = vector.shape_cast %27 : vector<1x128x512xf32> to vector<128x512xf32>
    %29 = vector.broadcast %26 : vector<128x1xf32> to vector<128x512xf32>
    %30 = arith.mulf %28, %29 : vector<128x512xf32>
    %c0_18 = arith.constant 0 : index
    %c0_19 = arith.constant 0 : index
    %c0_20 = arith.constant 0 : index
    %31 = vector.load %arg6[%c0_18, %c0_19, %c0_20] : memref<1x128x512xf32, #tpu.memory_space<vmem>>, vector<1x128x512xf32>
    %32 = vector.shape_cast %31 : vector<1x128x512xf32> to vector<128x512xf32>
    %33 = vector.shape_cast %30 : vector<128x512xf32> to vector<1x128x512xf32>
    tpu.vector_store %arg6[%c0_18, %c0_19, %c0_20], %33 {strides = array<i32>} : memref<1x128x512xf32, #tpu.memory_space<vmem>>, vector<1x128x512xf32>,
    return
  }
  func.func @transform_0(%arg0: i32) -> (i32, i32, i32) {
    %c0_i32 = arith.constant 0 : i32
    %c0_i32_0 = arith.constant 0 : i32
    %c0_i32_1 = arith.constant 0 : i32
    return %arg0, %c0_i32, %c0_i32_0 : i32, i32, i32
  }
  func.func @transform_1(%arg0: i32) -> (i32, i32) {
    %c0_i32 = arith.constant 0 : i32
    %c0_i32_0 = arith.constant 0 : i32
    %c0_i32_1 = arith.constant 0 : i32
    return %c0_i32, %c0_i32_0 : i32, i32
  }
  func.func @transform_2(%arg0: i32) -> (i32, i32) {
    %c0_i32 = arith.constant 0 : i32
    %c0_i32_0 = arith.constant 0 : i32
    %c0_i32_1 = arith.constant 0 : i32
    return %c0_i32, %c0_i32_0 : i32, i32
  }
  func.func @transform_3(%arg0: i32) -> (i32, i32) {
    %c0_i32 = arith.constant 0 : i32
    %c0_i32_0 = arith.constant 0 : i32
    %c0_i32_1 = arith.constant 0 : i32
    return %c0_i32, %c0_i32_0 : i32, i32
  }
  func.func @transform_4(%arg0: i32) -> (i32, i32) {
    %c0_i32 = arith.constant 0 : i32
    %c0_i32_0 = arith.constant 0 : i32
    %c0_i32_1 = arith.constant 0 : i32
    return %c0_i32, %c0_i32_0 : i32, i32
  }
  func.func @transform_5(%arg0: i32) -> (i32, i32, i32) {
    %c0_i32 = arith.constant 0 : i32
    %c0_i32_0 = arith.constant 0 : i32
    %c0_i32_1 = arith.constant 0 : i32
    return %arg0, %c0_i32, %c0_i32_0 : i32, i32, i32
  }
}

</mosaic_0001>

<bundles_post_ra>
// kernel: tpu_custom_call.1
= control target key start
LH: loop header
LB: loop body
LE: loop exit
PB: predicated region body
PF: predicated region fallthrough
CT: control target
= control target key end

     0   :  { %10 = vsyncpa [#allocation3], 0  ;;  %s2349_s0 = inlined_call_operand.hbm [shape: f32[2,128,512], index: 0, kind: input, shape index: {}]   ;;  %s2350_s1 = inlined_call_operand.vmem [shape: f32[128,8], index: 1, kind: input, shape index: {}]   ;;  %s2351_s2 = inlined_call_operand.vmem [shape: f32[1,8], index: 2, kind: input, shape index: {}]   ;;  %s2352_s3 = inlined_call_operand.vmem [shape: f32[128,8], index: 3, kind: input, shape index: {}]   ;;  %s2353_s4 = inlined_call_operand.vmem [shape: f32[128,1], index: 4, kind: input, shape index: {}]   ;;  %s2354_s5 = inlined_call_operand.hbm [shape: f32[2,128,512], index: 5, kind: output, shape index: {}]  }
   0x1   :  { %12 = vsyncpa [#allocation3 + $0x1], 0 }
   0x2   :  { %13 = vsyncpa [#allocation4], 0 }
   0x3   :  { %15 = vsyncpa [#allocation4 + $0x1], 0  ;;  %s1539_s18 = smov 0   ;;  %s1541_s19 = smov 0  }
   0x4   :  { %s1543_s20 = smov 0   ;;  %s1545_s21 = smov 0  }
   0x5 LB: > { %s1560_s22 = sadd.s32 4294967295, %s1502_s21   ;;  %s1192_s23 = sadd.s32 4294967294, %s1502_s21   ;;  %s1502_s21 = sphi %s1545_s21, %s2378_s21   ;;  %s1498_s20 = sphi %s1543_s20, %s2377_s20   ;;  %s1494_s19 = sphi %s1541_s19, %s2376_s19   ;;  %s1490_s18 = sphi %s1539_s18, %s2375_s18  }
   0x6   : > { %s1564_s24 = sadd.s32 1, %s1502_s21   ;;  %s28_s25 = sadd.s32 1, %s1498_s20 }
   0x7   : > { %s25_s26 = ssub.s32 %s1502_s21, %s1564_s24  ;;  %p35_p0 = scmp.ne.s32.totalorder %s1498_s20, %s1494_s19 }
   0x8   : > { %p26_p1 = scmp.eq.s32.totalorder %s25_s26, 0  ;;  %p36_p2 = scmp.eq.s32.totalorder %s1502_s21, 0 }
   0x9   : > { %p41_p3 = scmp.ne.s32.totalorder %s1494_s19, %s1490_s18  ;;  %p42_p4 = scmp.eq.s32.totalorder %s1560_s22, 0 }
   0xa   : > { %s1576_s27 = scalar_select %p26_p1, %s1498_s20, %s28_s25  }
   0xb   : > { %p1578_p5 = por %p36_p2, %p35_p0  ;;  %p1582_p6 = por %p42_p4, %p41_p3 }
   0xc   : > { %p149_p7 = scmp.eq.s32.totalorder %s1560_s22, 1  ;;  %p155_p8 = scmp.eq.s32.totalorder %s1192_s23, 1 }
   0xd   : > { %p1236_p10 = scmp.lt.s32.totalorder %s1502_s21, 2  ;;  %s187_s7 = sand.u32 1, %s1498_s20  }
   0xe   : > { %p1589_p11 = por %p149_p7, %p35_p0  ;;  %p1593_p12 = por %p155_p8, %p41_p3 }
   0xf   : > { %s1222_s8 = sshll.u32 %s1502_s21, 9  ;;  %s1195_s9 = sshll.u32 %s187_s7, 9 }
  0x10   : > { %s196_s12 = scalar_lea.hbm %s2349_s0, %s1222_s8  ;;  %s191_s14 = scalar_lea.vmem [#allocation2], %s1195_s9 }
  0x11   : > { %s197_s13 = sshll.u32 %s196_s12, 4  ;;  %s199_s15 = sshll.u32 %s191_s14, 4  ;;  %s198_s13 = int_to_ptr.hbm [resolvable:$true] %s197_s13  ;;  %s200_s15 = int_to_ptr.vmem [resolvable:$true] %s199_s15 }
  0x12   : > { %p1604_p13 = pnand %p1236_p10, %p1578_p5  ;;  %p1198_p0 = scmp.ge.s32.totalorder %s1502_s21, 1 }
  0x13   : > { %p207_p1 = scmp.lt.s32.totalorder %s1502_s21, 3  ;;  %s188_s17 = scalar_lea.sflag [#allocation3], %s187_s7 }
  0x14   : > { %s1406_s23 = sshra.s32 %s198_s13, 4  ;;  %p1410_p3 = pneg %p1604_p13  ;;  %s1407_s23 = int_to_ptr.hbm [resolvable:$true] %s1406_s23 }
  0x15   : > { %s1408_s25 = scalar_lea.hbm %s1407_s23, 512  ;;  %s1413_s28 = scalar_lea.hbm %s2349_s0, 1024 }
  0x16   : > { %p1409_p2 = scmp.ne.s32.totalorder %s1407_s23, %s1408_s25  ;;  %p1414_p5 = scmp.lt.s32.totalorder %s1407_s23, %s2349_s0 }
  0x17   : > { %p1415_p8 = scmp.lt.s32.totalorder %s1413_s28, %s1408_s25 }
  0x18   : > { %p1411_p4 = pnand %p1410_p3, %p1409_p2 }
  0x19   : > { %p1416_p10 = por %p1415_p8, %p1414_p5 }
  0x1a   : > { %p1412_p7 = pneg %p1411_p4 }
  0x1c   : > { %p1417_p9 = pnand %p1416_p10, %p1412_p7 }
  0x1e   : > { %1420 = shalt.err (!%p1417_p9)
}
  0x1f   : > { %s1504_s7 = smov 512   ;;  %s1505_s11 = smov 32  }
  0x20   : > { %1231 = dma.hbm_to_vmem [thread:$0]  (!%p1604_p13), %s198_s13, 8192, %s200_s15, %s188_s17, %s1504_s7, %s1504_s7, %s1505_s11  }
  0x21   : > { %p208_p2 = pnand %p1198_p0, %p207_p1 }
  0x22   : > { %s1625_s12 = sand.u32 (!%p208_p2), 1, %s1494_s19  }
  0x23   : > { %211 = sbr.rel (%p208_p2) target bundleno = 554 (0x22a), region = 40  ;;  %s1199_s14 = sshll.u32 (!%p208_p2), %s1625_s12, 9 }
  0x24   : > { %s214_s23 = scalar_lea.sflag (!%p208_p2), [#allocation3], %s1625_s12  ;;  %s1631_s25 = scalar_lea.vmem (!%p208_p2), [#allocation2], %s1199_s14 }
  0x28   : > { %1481 = dma.done.wait (%p1582_p6), %s214_s23, 8192  }
  0x29   : > { %1483 = vsyncadd (%p1582_p6), %s214_s23, 4294959104  ;;  %v245_v0 = vld [vmem:[%s1631_s25] sm:$0xff]  ;;  %v246_v1 = vld [vmem:[%s1631_s25 + $0x8] sm:$0xff]  ;;  %vm470_vm0 = vcmask 64512   ;;  %s2189_s28 = scalar_lea.vmem [#allocation5], %s1199_s14  ;;  %s1223_s14 = sshll.u32 %s1560_s22, 9 }
  0x2a   : > { %v247_v2 = vld [vmem:[%s1631_s25 + $0x10] sm:$0xff]  ;;  %v309_v3 = vadd.f32 %v246_v1, %v245_v0  ;;  %v253_v4 = vld [vmem:[%s1631_s25 + $0x40] sm:$0xff]  ;;  %v254_v5 = vld [vmem:[%s1631_s25 + $0x48] sm:$0xff]  ;;  %s1115_s22 = scalar_lea.hbm %s2354_s5, %s1223_s14  ;;  %s1116_s7 = sshll.u32 %s2189_s28, 4  ;;  %s1117_s7 = int_to_ptr.vmem [resolvable:$true] %s1116_s7 }
  0x2b   : > { %v248_v6 = vld [vmem:[%s1631_s25 + $0x18] sm:$0xff]  ;;  %v255_v7 = vld [vmem:[%s1631_s25 + $0x50] sm:$0xff]  ;;  %v319_v8 = vadd.f32 %v254_v5, %v253_v4  ;;  %v261_v9 = vld [vmem:[%s1631_s25 + $0x80] sm:$0xff]  ;;  %s1118_s11 = sshll.u32 %s1115_s22, 4  ;;  %s1104_s23 = scalar_lea.sflag [#allocation4], %s1625_s12  ;;  %s1119_s11 = int_to_ptr.hbm [resolvable:$true] %s1118_s11 }
  0x2c   : > { %v310_v10 = vadd.f32 %v309_v3, %v247_v2  ;;  %v256_v11 = vld [vmem:[%s1631_s25 + $0x58] sm:$0xff]  ;;  %v262_v12 = vld [vmem:[%s1631_s25 + $0x88] sm:$0xff]  ;;  %v263_v13 = vld [vmem:[%s1631_s25 + $0x90] sm:$0xff]  ;;  %s1450_s29 = sshra.s32 %s1119_s11, 4  ;;  %s1456_s17 = scalar_lea.hbm %s2354_s5, 1024  ;;  %s1451_s29 = int_to_ptr.hbm [resolvable:$true] %s1450_s29 }
  0x2d   : > { %v320_v14 = vadd.f32 %v319_v8, %v255_v7  ;;  %v329_v15 = vadd.f32 %v262_v12, %v261_v9  ;;  %v249_v16 = vld [vmem:[%s1631_s25 + $0x20] sm:$0xff]  ;;  %v250_v17 = vld [vmem:[%s1631_s25 + $0x28] sm:$0xff]  ;;  %v251_v18 = vld [vmem:[%s1631_s25 + $0x30] sm:$0xff]  ;;  %s1452_s13 = scalar_lea.hbm %s1451_s29, 512  ;;  %p1457_p0 = scmp.lt.s32.totalorder %s1451_s29, %s2354_s5 }
  0x2e   : > { %v311_v19 = vadd.f32 %v310_v10, %v248_v6  ;;  %v264_v20 = vld [vmem:[%s1631_s25 + $0x98] sm:$0xff]  ;;  %v314_v21 = vadd.f32 %v250_v17, %v249_v16  ;;  %v257_v22 = vld [vmem:[%s1631_s25 + $0x60] sm:$0xff]  ;;  %v258_v23 = vld [vmem:[%s1631_s25 + $0x68] sm:$0xff]  ;;  %p1453_p6 = scmp.ne.s32.totalorder %s1451_s29, %s1452_s13  ;;  %p1458_p1 = scmp.lt.s32.totalorder %s1456_s17, %s1452_s13 }
  0x2f   : > { %v321_v24 = vadd.f32 %v320_v14, %v256_v11  ;;  %v330_v25 = vadd.f32 %v329_v15, %v263_v13  ;;  %v259_v26 = vld [vmem:[%s1631_s25 + $0x70] sm:$0xff]  ;;  %v324_v27 = vadd.f32 %v258_v23, %v257_v22  ;;  %v265_v28 = vld [vmem:[%s1631_s25 + $0xa0] sm:$0xff]  ;;  %v266_v30 = vld [vmem:[%s1631_s25 + $0xa8] sm:$0xff] }
  0x30   : > { %312 = vadd.xlane.f32.xlu0 %v311_v19  ;;  %v315_v29 = vadd.f32 %v314_v21, %v251_v18  ;;  %v267_v31 = vld [vmem:[%s1631_s25 + $0xb0] sm:$0xff]  ;;  %v252_v33 = vld [vmem:[%s1631_s25 + $0x38] sm:$0xff]  ;;  %v334_v35 = vadd.f32 %v266_v30, %v265_v28  ;;  %v269_v36 = vld [vmem:[%s1631_s25 + $0xc0] sm:$0xff]  ;;  %p1454_p9 = pnand %p1453_p6, %p1589_p11  ;;  %p1459_p3 = por %p1458_p1, %p1457_p0 }
  0x31   : > { %322 = vadd.xlane.f32.xlu1 %v321_v24  ;;  %v331_v32 = vadd.f32 %v330_v25, %v264_v20  ;;  %v325_v34 = vadd.f32 %v324_v27, %v259_v26  ;;  %v270_v37 = vld [vmem:[%s1631_s25 + $0xc8] sm:$0xff]  ;;  %v260_v38 = vld [vmem:[%s1631_s25 + $0x78] sm:$0xff]  ;;  %v273_v39 = vld [vmem:[%s1631_s25 + $0xe0] sm:$0xff] }
  0x32   : > { %v274_v40 = vld [vmem:[%s1631_s25 + $0xe8] sm:$0xff]  ;;  %v335_v41 = vadd.f32 %v334_v35, %v267_v31  ;;  %v316_v42 = vadd.f32 %v315_v29, %v252_v33  ;;  %v268_v43 = vld [vmem:[%s1631_s25 + $0xb8] sm:$0xff]  ;;  %v339_v44 = vadd.f32 %v270_v37, %v269_v36  ;;  %v277_v45 = vld [vmem:[%s1631_s25 + $0x100] sm:$0xff]  ;;  %p1455_p13 = pneg %p1454_p9 }
  0x33   : > { %332 = vadd.xlane.f32.xlu2 %v331_v32  ;;  %v278_v46 = vld [vmem:[%s1631_s25 + $0x108] sm:$0xff]  ;;  %v326_v47 = vadd.f32 %v325_v34, %v260_v38  ;;  %v271_v48 = vld [vmem:[%s1631_s25 + $0xd0] sm:$0xff]  ;;  %v344_v49 = vadd.f32 %v274_v40, %v273_v39  ;;  %v272_v55 = vld [vmem:[%s1631_s25 + $0xd8] sm:$0xff] }
  0x34   : > { %v275_v50 = vld [vmem:[%s1631_s25 + $0xf0] sm:$0xff]  ;;  %v336_v51 = vadd.f32 %v335_v41, %v268_v43  ;;  %v349_v52 = vadd.f32 %v278_v46, %v277_v45  ;;  %v340_v53 = vadd.f32 %v339_v44, %v271_v48  ;;  %v281_v57 = vld [vmem:[%s1631_s25 + $0x120] sm:$0xff]  ;;  %v282_v58 = vld [vmem:[%s1631_s25 + $0x128] sm:$0xff]  ;;  %p1460_p4 = pnand %p1459_p3, %p1455_p13 }
  0x35   : > { %v279_v54 = vld [vmem:[%s1631_s25 + $0x110] sm:$0xff]  ;;  %v345_v56 = vadd.f32 %v344_v49, %v275_v50  ;;  %v276_v59 = vld [vmem:[%s1631_s25 + $0xf8] sm:$0xff]  ;;  %v285_v60 = vld [vmem:[%s1631_s25 + $0x140] sm:$0xff]  ;;  %v354_v1 = vadd.f32 %v282_v58, %v281_v57 }
  0x36   : > { %v286_v61 = vld [vmem:[%s1631_s25 + $0x148] sm:$0xff]  ;;  %v350_v62 = vadd.f32 %v349_v52, %v279_v54  ;;  %v341_v63 = vadd.f32 %v340_v53, %v272_v55  ;;  %v280_v0 = vld [vmem:[%s1631_s25 + $0x118] sm:$0xff]  ;;  %v289_v2 = vld [vmem:[%s1631_s25 + $0x160] sm:$0xff] }
  0x37   : > { %v290_v3 = vld [vmem:[%s1631_s25 + $0x168] sm:$0xff]  ;;  %v346_v4 = vadd.f32 %v345_v56, %v276_v59  ;;  %v283_v5 = vld [vmem:[%s1631_s25 + $0x130] sm:$0xff]  ;;  %v359_v6 = vadd.f32 %v286_v61, %v285_v60  ;;  %v284_v12 = vld [vmem:[%s1631_s25 + $0x138] sm:$0xff] }
  0x38   : > { %317 = vadd.xlane.f32.xlu0 %v316_v42  ;;  %v287_v7 = vld [vmem:[%s1631_s25 + $0x150] sm:$0xff]  ;;  %v351_v8 = vadd.f32 %v350_v62, %v280_v0  ;;  %v364_v9 = vadd.f32 %v290_v3, %v289_v2  ;;  %v355_v10 = vadd.f32 %v354_v1, %v283_v5  ;;  %v293_v14 = vld [vmem:[%s1631_s25 + $0x180] sm:$0xff]  ;;  %v294_v15 = vld [vmem:[%s1631_s25 + $0x188] sm:$0xff] }
  0x39   : > { %327 = vadd.xlane.f32.xlu1 %v326_v47  ;;  %v291_v11 = vld [vmem:[%s1631_s25 + $0x170] sm:$0xff]  ;;  %v360_v13 = vadd.f32 %v359_v6, %v287_v7  ;;  %v288_v16 = vld [vmem:[%s1631_s25 + $0x158] sm:$0xff]  ;;  %v297_v17 = vld [vmem:[%s1631_s25 + $0x1a0] sm:$0xff]  ;;  %v369_v22 = vadd.f32 %v294_v15, %v293_v14 }
  0x3a   : > { %v298_v18 = vld [vmem:[%s1631_s25 + $0x1a8] sm:$0xff]  ;;  %v365_v19 = vadd.f32 %v364_v9, %v291_v11  ;;  %v356_v20 = vadd.f32 %v355_v10, %v284_v12  ;;  %v292_v21 = vld [vmem:[%s1631_s25 + $0x178] sm:$0xff]  ;;  %v301_v23 = vld [vmem:[%s1631_s25 + $0x1c0] sm:$0xff] }
  0x3b   : > { %337 = vadd.xlane.f32.xlu2 %v336_v51  ;;  %v302_v24 = vld [vmem:[%s1631_s25 + $0x1c8] sm:$0xff]  ;;  %v361_v25 = vadd.f32 %v360_v13, %v288_v16  ;;  %v295_v26 = vld [vmem:[%s1631_s25 + $0x190] sm:$0xff]  ;;  %v374_v27 = vadd.f32 %v298_v18, %v297_v17  ;;  %v296_v33 = vld [vmem:[%s1631_s25 + $0x198] sm:$0xff] }
  0x3c   : > { %v299_v28 = vld [vmem:[%s1631_s25 + $0x1b0] sm:$0xff]  ;;  %v366_v29 = vadd.f32 %v365_v19, %v292_v21  ;;  %v379_v30 = vadd.f32 %v302_v24, %v301_v23  ;;  %v370_v31 = vadd.f32 %v369_v22, %v295_v26  ;;  %v305_v35 = vld [vmem:[%s1631_s25 + $0x1e0] sm:$0xff]  ;;  %v306_v36 = vld [vmem:[%s1631_s25 + $0x1e8] sm:$0xff] }
  0x3d   : > { %v303_v32 = vld [vmem:[%s1631_s25 + $0x1d0] sm:$0xff]  ;;  %v375_v34 = vadd.f32 %v374_v27, %v299_v28  ;;  %v300_v37 = vld [vmem:[%s1631_s25 + $0x1b8] sm:$0xff]  ;;  %v384_v41 = vadd.f32 %v306_v36, %v305_v35  ;;  %v405_v52 = vld [vmem:[%s2350_s1] sm:$0xff] }
  0x3e   : > { %v380_v38 = vadd.f32 %v379_v30, %v303_v32  ;;  %v371_v39 = vadd.f32 %v370_v31, %v296_v33  ;;  %v304_v40 = vld [vmem:[%s1631_s25 + $0x1d8] sm:$0xff]  ;;  %v307_v43 = vld [vmem:[%s1631_s25 + $0x1f0] sm:$0xff]  ;;  %v406_v55 = vld [vmem:[%s2350_s1 + $0x8] sm:$0xff] }
  0x3f   : > { %v376_v42 = vadd.f32 %v375_v34, %v300_v37  ;;  %v385_v45 = vadd.f32 %v384_v41, %v307_v43  ;;  %v308_v46 = vld [vmem:[%s1631_s25 + $0x1f8] sm:$0xff]  ;;  %v407_v54 = vld [vmem:[%s2350_s1 + $0x10] sm:$0xff]  ;;  %v409_v2 = vld [vmem:[%s2350_s1 + $0x20] sm:$0xff] }
  0x40   : > { %342 = vadd.xlane.f32.xlu0 %v341_v63  ;;  %v381_v44 = vadd.f32 %v380_v38, %v304_v40  ;;  %v408_v59 = vld [vmem:[%s2350_s1 + $0x18] sm:$0xff]  ;;  %v411_v13 = vld [vmem:[%s2350_s1 + $0x30] sm:$0xff]  ;;  %v413_v23 = vld [vmem:[%s2350_s1 + $0x40] sm:$0xff] }
  0x41   : > { %347 = vadd.xlane.f32.xlu1 %v346_v4  ;;  %v386_v47 = vadd.f32 %v385_v45, %v308_v46  ;;  %v412_v17 = vld [vmem:[%s2350_s1 + $0x38] sm:$0xff]  ;;  %v414_v34 = vld [vmem:[%s2350_s1 + $0x48] sm:$0xff]  ;;  %v415_v38 = vld [vmem:[%s2350_s1 + $0x50] sm:$0xff] }
  0x42   : > { %v416_v43 = vld [vmem:[%s2350_s1 + $0x58] sm:$0xff] }
  0x43   : > { %352 = vadd.xlane.f32.xlu2 %v351_v8  ;;  %v410_v8 = vld [vmem:[%s2350_s1 + $0x28] sm:$0xff] }
  0x48   : > { %357 = vadd.xlane.f32.xlu0 %v356_v20 }
  0x49   : > { %362 = vadd.xlane.f32.xlu1 %v361_v25 }
  0x4b   : > { %367 = vadd.xlane.f32.xlu2 %v366_v29 }
  0x50   : > { %372 = vadd.xlane.f32.xlu0 %v371_v39 }
  0x51   : > { %377 = vadd.xlane.f32.xlu1 %v376_v42 }
  0x53   : > { %382 = vadd.xlane.f32.xlu2 %v381_v44 }
  0x58   : > { %387 = vadd.xlane.f32.xlu0 %v386_v47 }
  0xa3   : > { %v313_v48 = vpop.xlane.xlu0 %312 }
  0xa4   : > { %v323_v49 = vpop.xlane.xlu1 %322  ;;  %v389_v51 = vmul.f32 0.001953125, %v313_v48 }
  0xa5   : > { %v391_v53 = vmul.f32 0.001953125, %v323_v49 }
  0xa6   : > { %v333_v50 = vpop.xlane.xlu2 %332  ;;  %v454_v57 = vmul.f32 %v405_v52, %v389_v51 }
  0xa7   : > { %v456_v62 = vmul.f32 %v407_v54, %v391_v53  ;;  %v393_v63 = vmul.f32 0.001953125, %v333_v50  ;;  %v417_v53 = vld [vmem:[%s2350_s1 + $0x60] sm:$0xff] }
  0xa8   : > { %v471_v4 = vsel %vm470_vm0, %v454_v57, 0.0  ;;  %v418_v57 = vld [vmem:[%s2350_s1 + $0x68] sm:$0xff] }
  0xa9   : > { %v474_v9 = vsel %vm470_vm0, %v456_v62, 0.0  ;;  %v458_v10 = vmul.f32 %v409_v2, %v393_v63 }
  0xab   : > { %v318_v56 = vpop.xlane.xlu0 %317  ;;  %v478_v21 = vsel %vm470_vm0, %v458_v10, 0.0 }
  0xac   : > { %v390_v58 = vmul.f32 0.001953125, %v318_v56  ;;  %v328_v60 = vpop.xlane.xlu1 %327 }
  0xad   : > { %v392_v61 = vmul.f32 0.001953125, %v328_v60 }
  0xae   : > { %v455_v0 = vmul.f32 %v406_v55, %v390_v58  ;;  %v338_v1 = vpop.xlane.xlu2 %337 }
  0xaf   : > { %v457_v3 = vmul.f32 %v408_v59, %v392_v61  ;;  %v394_v6 = vmul.f32 0.001953125, %v338_v1  ;;  %v419_v61 = vld [vmem:[%s2350_s1 + $0x70] sm:$0xff] }
  0xb0   : > { %v472_v5 = vsel %vm470_vm0, %v455_v0, 0.0 }
  0xb1   : > { %v473_v7 = vadd.f32 %v472_v5, %v471_v4  ;;  %v476_v11 = vsel %vm470_vm0, %v457_v3, 0.0  ;;  %v459_v15 = vmul.f32 %v410_v8, %v394_v6 }
  0xb3   : > { %v475_v12 = vadd.f32 %v474_v9, %v473_v7  ;;  %v343_v14 = vpop.xlane.xlu0 %342  ;;  %v480_v28 = vsel %vm470_vm0, %v459_v15, 0.0  ;;  %v420_v7 = vld [vmem:[%s2350_s1 + $0x78] sm:$0xff] }
  0xb4   : > { %v395_v16 = vmul.f32 0.001953125, %v343_v14  ;;  %v348_v18 = vpop.xlane.xlu1 %347 }
  0xb5   : > { %v477_v19 = vadd.f32 %v476_v11, %v475_v12  ;;  %v396_v20 = vmul.f32 0.001953125, %v348_v18 }
  0xb6   : > { %v460_v22 = vmul.f32 %v411_v13, %v395_v16  ;;  %v353_v24 = vpop.xlane.xlu2 %352 }
  0xb7   : > { %v479_v25 = vadd.f32 %v478_v21, %v477_v19  ;;  %v461_v26 = vmul.f32 %v412_v17, %v396_v20  ;;  %v397_v27 = vmul.f32 0.001953125, %v353_v24  ;;  %v421_v20 = vld [vmem:[%s2351_s2] sm:$0x1]  ;;  %v424_v24 = vld [vmem:[%s2352_s3 + $0x10] sm:$0xff] }
  0xb8   : > { %v482_v31 = vsel %vm470_vm0, %v460_v22, 0.0 }
  0xb9   : > { %v481_v29 = vadd.f32 %v480_v28, %v479_v25  ;;  %v462_v30 = vmul.f32 %v413_v23, %v397_v27  ;;  %v484_v32 = vsel %vm470_vm0, %v461_v26, 0.0  ;;  %v423_v25 = vld [vmem:[%s2352_s3 + $0x8] sm:$0xff]  ;;  %v422_v26 = vld [vmem:[%s2352_s3] sm:$0xff] }
  0xbb   : > { %v483_v33 = vadd.f32 %v482_v31, %v481_v29  ;;  %v358_v35 = vpop.xlane.xlu0 %357  ;;  %v486_v36 = vsel %vm470_vm0, %v462_v30, 0.0 }
  0xbc   : > { %v398_v37 = vmul.f32 0.001953125, %v358_v35  ;;  %v363_v39 = vpop.xlane.xlu1 %362  ;;  %v426_v35 = vld [vmem:[%s2352_s3 + $0x20] sm:$0xff] }
  0xbd   : > { %v485_v40 = vadd.f32 %v484_v32, %v483_v33  ;;  %v399_v41 = vmul.f32 0.001953125, %v363_v39 }
  0xbe   : > { %v463_v42 = vmul.f32 %v414_v34, %v398_v37  ;;  %v368_v44 = vpop.xlane.xlu2 %367  ;;  %v427_v34 = vld [vmem:[%s2352_s3 + $0x28] sm:$0xff] }
  0xbf   : > { %v487_v45 = vadd.f32 %v486_v36, %v485_v40  ;;  %v464_v46 = vmul.f32 %v415_v38, %v399_v41  ;;  %v400_v47 = vmul.f32 0.001953125, %v368_v44  ;;  %v425_v36 = vld [vmem:[%s2352_s3 + $0x18] sm:$0xff] }
  0xc0   : > { %v488_v48 = vsel %vm470_vm0, %v463_v42, 0.0  ;;  %v429_v44 = vld [vmem:[%s2352_s3 + $0x38] sm:$0xff] }
  0xc1   : > { %v489_v49 = vadd.f32 %v488_v48, %v487_v45  ;;  %v490_v50 = vsel %vm470_vm0, %v464_v46, 0.0  ;;  %v465_v51 = vmul.f32 %v416_v43, %v400_v47  ;;  %v430_v43 = vld [vmem:[%s2352_s3 + $0x40] sm:$0xff]  ;;  %v428_v45 = vld [vmem:[%s2352_s3 + $0x30] sm:$0xff] }
  0xc3   : > { %v491_v52 = vadd.f32 %v490_v50, %v489_v49  ;;  %v373_v54 = vpop.xlane.xlu0 %372  ;;  %v492_v55 = vsel %vm470_vm0, %v465_v51, 0.0 }
  0xc4   : > { %v401_v56 = vmul.f32 0.001953125, %v373_v54  ;;  %v378_v58 = vpop.xlane.xlu1 %377  ;;  %v431_v54 = vld [vmem:[%s2352_s3 + $0x48] sm:$0xff] }
  0xc5   : > { %v402_v59 = vmul.f32 0.001953125, %v378_v58  ;;  %v493_v63 = vadd.f32 %v492_v55, %v491_v52  ;;  %v433_v52 = vld [vmem:[%s2352_s3 + $0x58] sm:$0xff] }
  0xc6   : > { %v466_v60 = vmul.f32 %v417_v53, %v401_v56  ;;  %v383_v62 = vpop.xlane.xlu2 %382  ;;  %v432_v53 = vld [vmem:[%s2352_s3 + $0x50] sm:$0xff] }
  0xc7   : > { %v467_v0 = vmul.f32 %v418_v57, %v402_v59  ;;  %v403_v1 = vmul.f32 0.001953125, %v383_v62  ;;  %v435_v62 = vld [vmem:[%s2352_s3 + $0x68] sm:$0xff] }
  0xc8   : > { %v494_v2 = vsel %vm470_vm0, %v466_v60, 0.0 }
  0xc9   : > { %v495_v3 = vadd.f32 %v494_v2, %v493_v63  ;;  %v496_v4 = vsel %vm470_vm0, %v467_v0, 0.0  ;;  %v468_v5 = vmul.f32 %v419_v61, %v403_v1  ;;  %v436_v61 = vld [vmem:[%s2352_s3 + $0x70] sm:$0xff]  ;;  %v434_v63 = vld [vmem:[%s2352_s3 + $0x60] sm:$0xff] }
  0xcb   : > { %v497_v6 = vadd.f32 %v496_v4, %v495_v3  ;;  %v388_v8 = vpop.xlane.xlu0 %387  ;;  %v498_v9 = vsel %vm470_vm0, %v468_v5, 0.0 }
  0xcc   : > { %v404_v10 = vmul.f32 0.001953125, %v388_v8 }
  0xcd   : > { %v499_v12 = vadd.f32 %v498_v9, %v497_v6  ;;  %v437_v6 = vld [vmem:[%s2352_s3 + $0x78] sm:$0xff]  ;;  %v440_v9 = vld [vmem:[%s2353_s4 + $0x10] sm:$0xff] }
  0xce   : > { %v469_v11 = vmul.f32 %v420_v7, %v404_v10  ;;  %v439_v10 = vld [vmem:[%s2353_s4 + $0x8] sm:$0xff] }
  0xd0   : > { %v500_v13 = vsel %vm470_vm0, %v469_v11, 0.0  ;;  %v438_v11 = vld [vmem:[%s2353_s4] sm:$0xff] }
  0xd1   : > { %v501_v14 = vadd.f32 %v500_v13, %v499_v12 }
  0xd3   : > { %v502_v15 = vrot.slane %v501_v14, 4 }
  0xd5   : > { %v503_v16 = vadd.f32 %v502_v15, %v501_v14 }
  0xd7   : > { %v504_v17 = vrot.slane %v503_v16, 2 }
  0xd9   : > { %v505_v18 = vadd.f32 %v504_v17, %v503_v16 }
  0xdb   : > { %v506_v19 = vrot.slane %v505_v18, 1 }
  0xdd   : > { %v507_v21 = vadd.f32 %v506_v19, %v505_v18 }
  0xdf   : > { %v508_v22 = vadd.f32 %v507_v21, %v421_v20  ;;  %v1506_v20 = vmov 0  }
  0xe0   : > { %1277 = vset.pattern.permute.xlu1 %v1506_v20  ;;  %1276 = vset.pattern.permute.xlu0 %v1506_v20 }
  0xe1   : > { %v509_v23 = vmax.f32 %v508_v22, 0.0  ;;  %1275 = vset.pattern.permute.xlu2 %v1506_v20  ;;  %v443_v22 = vld [vmem:[%s2353_s4 + $0x28] sm:$0xff] }
  0xe3   : > { %v510_v27 = vperm.slane %v509_v23, 0  ;;  %v442_v23 = vld [vmem:[%s2353_s4 + $0x20] sm:$0xff] }
  0xe5   : > { %v513_v28 = vmul.f32 %v510_v27, %v424_v24  ;;  %v512_v29 = vmul.f32 %v510_v27, %v423_v25  ;;  %v511_v30 = vmul.f32 %v510_v27, %v422_v26  ;;  %v516_v37 = vmul.f32 %v510_v27, %v427_v34  ;;  %v441_v24 = vld [vmem:[%s2353_s4 + $0x18] sm:$0xff] }
  0xe6   : > { %v515_v38 = vmul.f32 %v510_v27, %v426_v35  ;;  %v514_v39 = vmul.f32 %v510_v27, %v425_v36  ;;  %v519_v46 = vmul.f32 %v510_v27, %v430_v43  ;;  %v518_v47 = vmul.f32 %v510_v27, %v429_v44 }
  0xe7   : > { %v533_v31 = vsel %vm470_vm0, %v513_v28, 0.0  ;;  %v530_v32 = vsel %vm470_vm0, %v512_v29, 0.0  ;;  %v527_v33 = vsel %vm470_vm0, %v511_v30, 0.0  ;;  %v542_v40 = vsel %vm470_vm0, %v516_v37, 0.0 }
  0xe8   : > { %534 = vadd.xlane.f32.xlu0 %v533_v31  ;;  %531 = vadd.xlane.f32.xlu2 %v530_v32  ;;  %v539_v41 = vsel %vm470_vm0, %v515_v38, 0.0  ;;  %v536_v42 = vsel %vm470_vm0, %v514_v39, 0.0  ;;  %v517_v48 = vmul.f32 %v510_v27, %v428_v45  ;;  %v551_v49 = vsel %vm470_vm0, %v519_v46, 0.0 }
  0xe9   : > { %528 = vadd.xlane.f32.xlu1 %v527_v33  ;;  %v548_v50 = vsel %vm470_vm0, %v518_v47, 0.0  ;;  %v522_v55 = vmul.f32 %v510_v27, %v433_v52  ;;  %v521_v56 = vmul.f32 %v510_v27, %v432_v53  ;;  %v520_v57 = vmul.f32 %v510_v27, %v431_v54 }
  0xea   : > { %v545_v51 = vsel %vm470_vm0, %v517_v48, 0.0  ;;  %v525_v0 = vmul.f32 %v510_v27, %v436_v61  ;;  %v524_v1 = vmul.f32 %v510_v27, %v435_v62  ;;  %v523_v2 = vmul.f32 %v510_v27, %v434_v63 }
  0xeb   : > { %v560_v58 = vsel %vm470_vm0, %v522_v55, 0.0  ;;  %v557_v59 = vsel %vm470_vm0, %v521_v56, 0.0  ;;  %v554_v60 = vsel %vm470_vm0, %v520_v57, 0.0  ;;  %v526_v7 = vmul.f32 %v510_v27, %v437_v6 }
  0xec   : > { %v569_v3 = vsel %vm470_vm0, %v525_v0, 0.0  ;;  %v566_v4 = vsel %vm470_vm0, %v524_v1, 0.0  ;;  %v563_v5 = vsel %vm470_vm0, %v523_v2, 0.0  ;;  %v449_v2 = vld [vmem:[%s2353_s4 + $0x58] sm:$0xff] }
  0xed   : > { %v572_v8 = vsel %vm470_vm0, %v526_v7, 0.0 }
  0xf0   : > { %543 = vadd.xlane.f32.xlu0 %v542_v40  ;;  %540 = vadd.xlane.f32.xlu2 %v539_v41  ;;  %v446_v40 = vld [vmem:[%s2353_s4 + $0x40] sm:$0xff]  ;;  %v445_v41 = vld [vmem:[%s2353_s4 + $0x38] sm:$0xff] }
  0xf1   : > { %537 = vadd.xlane.f32.xlu1 %v536_v42  ;;  %v444_v42 = vld [vmem:[%s2353_s4 + $0x30] sm:$0xff] }
  0xf8   : > { %552 = vadd.xlane.f32.xlu0 %v551_v49  ;;  %549 = vadd.xlane.f32.xlu2 %v548_v50 }
  0xf9   : > { %546 = vadd.xlane.f32.xlu1 %v545_v51 }
 0x100   : > { %561 = vadd.xlane.f32.xlu0 %v560_v58  ;;  %558 = vadd.xlane.f32.xlu2 %v557_v59 }
 0x101   : > { %555 = vadd.xlane.f32.xlu1 %v554_v60 }
 0x108   : > { %570 = vadd.xlane.f32.xlu0 %v569_v3  ;;  %567 = vadd.xlane.f32.xlu2 %v566_v4  ;;  %v448_v3 = vld [vmem:[%s2353_s4 + $0x50] sm:$0xff] }
 0x109   : > { %564 = vadd.xlane.f32.xlu1 %v563_v5 }
 0x111   : > { %573 = vadd.xlane.f32.xlu1 %v572_v8  ;;  %v447_v8 = vld [vmem:[%s2353_s4 + $0x48] sm:$0xff] }
 0x15b   : > { %v535_v12 = vpop.xlane.xlu0 %534  ;;  %v532_v13 = vpop.xlane.xlu2 %531 }
 0x15c   : > { %v577_v14 = vadd.f32 %v535_v12, %v440_v9  ;;  %v576_v15 = vadd.f32 %v532_v13, %v439_v10  ;;  %v529_v16 = vpop.xlane.xlu1 %528 }
 0x15d   : > { %v575_v17 = vadd.f32 %v529_v16, %v438_v11 }
 0x15e   : > { %v1203_v18 = vmul.f32 -1.442695, %v577_v14  ;;  %v1202_v19 = vmul.f32 -1.442695, %v576_v15 }
 0x15f   : > { %v1201_v21 = vmul.f32 -1.442695, %v575_v17 }
 0x160   : > { %1278 = vpow2.f32 %v1203_v18 }
 0x161   : > { %1280 = vpow2.f32 %v1202_v19 }
 0x162   : > { %1282 = vpow2.f32 %v1201_v21 }
 0x163   : > { %v544_v25 = vpop.xlane.xlu0 %543  ;;  %v541_v26 = vpop.xlane.xlu2 %540 }
 0x164   : > { %v580_v27 = vadd.f32 %v544_v25, %v443_v22  ;;  %v579_v28 = vadd.f32 %v541_v26, %v442_v23  ;;  %v538_v29 = vpop.xlane.xlu1 %537 }
 0x165   : > { %v578_v30 = vadd.f32 %v538_v29, %v441_v24 }
 0x166   : > { %v1279_v31 = vpop.eup %1278  ;;  %v1206_v32 = vmul.f32 -1.442695, %v580_v27  ;;  %v1205_v37 = vmul.f32 -1.442695, %v579_v28 }
 0x167   : > { %v1281_v33 = vpop.eup %1280  ;;  %v1850_v34 = vadd.f32 1.0, %v1279_v31  ;;  %v1204_v39 = vmul.f32 -1.442695, %v578_v30 }
 0x168   : > { %v1283_v35 = vpop.eup %1282  ;;  %v1852_v36 = vadd.f32 1.0, %v1281_v33  ;;  %1284 = vpow2.f32 %v1206_v32 }
 0x169   : > { %1286 = vrcp.f32 %v1850_v34  ;;  %v1855_v38 = vadd.f32 1.0, %v1283_v35  ;;  %v694_v45 = vand.u32 2147483647, %v1850_v34  ;;  %v696_v52 = vand.u32 2147483648, %v1850_v34 }
 0x16a   : > { %1288 = vrcp.f32 %v1852_v36  ;;  %v681_v49 = vand.u32 2147483648, %v1852_v36  ;;  %v679_v51 = vand.u32 2147483647, %v1852_v36  ;;  %vm690_vm1 = vweird.f32 %v1850_v34 }
 0x16b   : > { %1290 = vrcp.f32 %v1855_v38  ;;  %v553_v43 = vpop.xlane.xlu0 %552  ;;  %v550_v44 = vpop.xlane.xlu2 %549  ;;  %vm675_vm2 = vweird.f32 %v1852_v36  ;;  %v666_v59 = vand.u32 2147483648, %v1855_v38  ;;  %vm1885_vm3 = vcmp.eq.f32.partialorder %v694_v45, 8.507059e+37 }
 0x16c   : > { %1292 = vpow2.f32 %v1205_v37  ;;  %v583_v46 = vadd.f32 %v553_v43, %v446_v40  ;;  %v582_v47 = vadd.f32 %v550_v44, %v445_v41  ;;  %v547_v48 = vpop.xlane.xlu1 %546  ;;  %v1881_v61 = vor.u32 1.1754944e-38, %v681_v49  ;;  %v451_v44 = vld [vmem:[%s2353_s4 + $0x68] sm:$0xff] }
 0x16d   : > { %1294 = vpow2.f32 %v1204_v39  ;;  %v581_v50 = vadd.f32 %v547_v48, %v444_v42  ;;  %v664_v0 = vand.u32 2147483647, %v1855_v38  ;;  %vm1901_vm4 = vcmp.eq.f32.partialorder %v679_v51, 8.507059e+37  ;;  %v450_v48 = vld [vmem:[%s2353_s4 + $0x60] sm:$0xff] }
 0x16e   : > { %v1285_v53 = vpop.eup %1284  ;;  %v1209_v54 = vmul.f32 -1.442695, %v583_v46  ;;  %v1208_v55 = vmul.f32 -1.442695, %v582_v47  ;;  %v697_v6 = vor.u32 1.1754944e-38, %v696_v52  ;;  %vm660_vm7 = vweird.f32 %v1855_v38 }
 0x16f   : > { %v1873_v56 = vpop.eup %1286  ;;  %v1875_v57 = vadd.f32 1.0, %v1285_v53  ;;  %v1207_v58 = vmul.f32 -1.442695, %v581_v50  ;;  %v667_v16 = vor.u32 1.1754944e-38, %v666_v59  ;;  %vm1918_vm8 = vcmp.eq.f32.partialorder %v664_v0, 8.507059e+37 }
 0x170   : > { %v1879_v60 = vpop.eup %1288  ;;  %1296 = vpow2.f32 %v1209_v54  ;;  %v686_v62 = vmul.f32 %v1873_v56, %v1850_v34  ;;  %vm691_vm5 = vweird.f32 %v1873_v56 }
 0x171   : > { %v1890_v1 = vpop.eup %1290  ;;  %1298 = vrcp.f32 %v1875_v57  ;;  %v671_v4 = vmul.f32 %v1879_v60, %v1852_v36  ;;  %vm676_vm6 = vweird.f32 %v1879_v60  ;;  %vm692_vm10 = vmor %vm690_vm1, %vm691_vm5  ;;  %v452_v36 = vld [vmem:[%s2353_s4 + $0x70] sm:$0xff]  ;;  %v739_v52 = vand.u32 2147483647, %v1875_v57 }
 0x172   : > { %v1293_v7 = vpop.eup %1292  ;;  %1300 = vpow2.f32 %v1208_v55  ;;  %v687_v9 = vsub.f32 1.0, %v686_v62  ;;  %v656_v10 = vmul.f32 %v1890_v1, %v1855_v38  ;;  %vm661_vm9 = vweird.f32 %v1890_v1  ;;  %vm677_vm11 = vmor %vm675_vm2, %vm676_vm6 }
 0x173   : > { %v1295_v11 = vpop.eup %1294  ;;  %v1913_v12 = vadd.f32 1.0, %v1293_v7  ;;  %1302 = vpow2.f32 %v1207_v58  ;;  %v562_v13 = vpop.xlane.xlu0 %561  ;;  %v672_v15 = vsub.f32 1.0, %v671_v4  ;;  %vm662_vm12 = vmor %vm660_vm7, %vm661_vm9  ;;  %v741_v59 = vand.u32 2147483648, %v1875_v57 }
 0x174   : > { %v559_v14 = vpop.xlane.xlu2 %558  ;;  %v1915_v17 = vadd.f32 1.0, %v1295_v11  ;;  %v586_v18 = vadd.f32 %v562_v13, %v449_v2  ;;  %v556_v20 = vpop.xlane.xlu1 %555  ;;  %v688_v21 = vmul.f32 %v1873_v56, %v687_v9  ;;  %v657_v25 = vsub.f32 1.0, %v656_v10 }
 0x175   : > { %v585_v19 = vadd.f32 %v559_v14, %v448_v3  ;;  %v584_v23 = vadd.f32 %v556_v20, %v447_v8  ;;  %v673_v24 = vmul.f32 %v1879_v60, %v672_v15  ;;  %vm735_vm14 = vweird.f32 %v1875_v57 }
 0x176   : > { %v1297_v26 = vpop.eup %1296  ;;  %1304 = vrcp.f32 %v1915_v17  ;;  %v1212_v27 = vmul.f32 -1.442695, %v586_v18  ;;  %v689_v29 = vadd.f32 %v1873_v56, %v688_v21  ;;  %v658_v33 = vmul.f32 %v1890_v1, %v657_v25 }
 0x177   : > { %v1211_v28 = vmul.f32 -1.442695, %v585_v19  ;;  %v1926_v30 = vpop.eup %1298  ;;  %1306 = vrcp.f32 %v1913_v12  ;;  %v1929_v31 = vadd.f32 1.0, %v1297_v26  ;;  %v674_v32 = vadd.f32 %v1879_v60, %v673_v24 }
 0x178   : > { %v1301_v35 = vpop.eup %1300  ;;  %1308 = vpow2.f32 %v1212_v27  ;;  %v1210_v37 = vmul.f32 -1.442695, %v584_v23  ;;  %v693_v39 = vsel %vm692_vm10, %v1873_v56, %v689_v29  ;;  %v731_v40 = vmul.f32 %v1926_v30, %v1875_v57 }
 0x179   : > { %v1303_v41 = vpop.eup %1302  ;;  %1310 = vrcp.f32 %v1929_v31  ;;  %v1945_v34 = vadd.f32 1.0, %v1301_v35  ;;  %v678_v42 = vsel %vm677_vm11, %v1879_v60, %v674_v32  ;;  %v698_v43 = vsel %vm1885_vm3, %v697_v6, %v693_v39 }
 0x17a   : > { %v1956_v45 = vadd.f32 1.0, %v1303_v41  ;;  %1312 = vpow2.f32 %v1211_v28  ;;  %v683_v46 = vsel %vm1901_vm4, %v1881_v61, %v678_v42  ;;  %907 = vperm.xlu1 %1277, %v698_v43   ;;  %v659_v47 = vadd.f32 %v1890_v1, %v658_v33 }
 0x17b   : > { %1314 = vrcp.f32 %v1945_v34  ;;  %902 = vperm.xlu0 %1276, %v683_v46   ;;  %v571_v49 = vpop.xlane.xlu0 %570  ;;  %v732_v51 = vsub.f32 1.0, %v731_v40  ;;  %vm736_vm13 = vweird.f32 %v1926_v30  ;;  %vm740_vm15 = vcmp.eq.f32.partialorder %v739_v52, 8.507059e+37 }
 0x17c   : > { %v568_v50 = vpop.xlane.xlu2 %567  ;;  %v1972_v53 = vpop.eup %1304  ;;  %v663_v54 = vsel %vm662_vm12, %v1890_v1, %v659_v47  ;;  %v589_v55 = vadd.f32 %v571_v49, %v452_v36  ;;  %1316 = vpow2.f32 %v1210_v37  ;;  %vm737_vm0 = vmor %vm735_vm14, %vm736_vm13  ;;  %v742_v8 = vor.u32 1.1754944e-38, %v741_v59 }
 0x17d   : > { %v588_v56 = vadd.f32 %v568_v50, %v451_v44  ;;  %v565_v58 = vpop.xlane.xlu1 %564  ;;  %v1976_v60 = vpop.eup %1306  ;;  %v668_v38 = vsel %vm1918_vm8, %v667_v16, %v663_v54  ;;  %v733_v62 = vmul.f32 %v1926_v30, %v732_v51  ;;  %1318 = vrcp.f32 %v1956_v45  ;;  %v453_v16 = vld [vmem:[%s2353_s4 + $0x78] sm:$0xff] }
 0x17e   : > { %v587_v61 = vadd.f32 %v565_v58, %v450_v48  ;;  %v1309_v63 = vpop.eup %1308  ;;  %897 = vperm.xlu2 %1275, %v668_v38   ;;  %v1215_v0 = vmul.f32 -1.442695, %v589_v55  ;;  %v701_v5 = vmul.f32 %v1972_v53, %v1915_v17  ;;  %v709_v9 = vand.u32 2147483647, %v1915_v17 }
 0x17f   : > { %v1214_v1 = vmul.f32 -1.442695, %v588_v56  ;;  %v1983_v2 = vpop.eup %1310  ;;  %v1985_v3 = vadd.f32 1.0, %v1309_v63  ;;  %v734_v4 = vadd.f32 %v1926_v30, %v733_v62  ;;  %v711_v15 = vand.u32 2147483648, %v1915_v17 }
 0x180   : > { %v1313_v6 = vpop.eup %1312  ;;  %1320 = vpow2.f32 %v1215_v0  ;;  %v1213_v7 = vmul.f32 -1.442695, %v587_v61  ;;  %v702_v13 = vsub.f32 1.0, %v701_v5  ;;  %vm706_vm1 = vweird.f32 %v1972_v53 }
 0x181   : > { %v1993_v57 = vpop.eup %1314  ;;  %1322 = vrcp.f32 %v1985_v3  ;;  %v1996_v10 = vadd.f32 1.0, %v1313_v6  ;;  %v738_v11 = vsel %vm737_vm0, %v1926_v30, %v734_v4  ;;  %v776_v20 = vmul.f32 %v1983_v2, %v1929_v31 }
 0x182   : > { %1324 = vpow2.f32 %v1214_v1  ;;  %v743_v14 = vsel %vm740_vm15, %v742_v8, %v738_v11  ;;  %v1317_v18 = vpop.eup %1316  ;;  %v703_v19 = vmul.f32 %v1972_v53, %v702_v13  ;;  %vm705_vm2 = vweird.f32 %v1915_v17 }
 0x183   : > { %1326 = vrcp.f32 %v1996_v10  ;;  %922 = vperm.xlu1 %1277, %v743_v14   ;;  %v2008_v21 = vpop.eup %1318  ;;  %v2010_v22 = vadd.f32 1.0, %v1317_v18  ;;  %vm2013_vm3 = vcmp.eq.f32.partialorder %v709_v9, 8.507059e+37  ;;  %v777_v27 = vsub.f32 1.0, %v776_v20  ;;  %vm707_vm5 = vmor %vm705_vm2, %vm706_vm1 }
 0x184   : > { %1328 = vpow2.f32 %v1213_v7  ;;  %v704_v25 = vadd.f32 %v1972_v53, %v703_v19  ;;  %vm780_vm4 = vweird.f32 %v1929_v31  ;;  %v712_v29 = vor.u32 1.1754944e-38, %v711_v15 }
 0x185   : > { %v574_v24 = vpop.xlane.xlu1 %573  ;;  %vm781_vm6 = vweird.f32 %v1983_v2  ;;  %v786_v30 = vand.u32 2147483648, %v1929_v31  ;;  %v761_v17 = vmul.f32 %v1993_v57, %v1945_v34  ;;  %v778_v37 = vmul.f32 %v1983_v2, %v777_v27 }
 0x186   : > { %v590_v26 = vadd.f32 %v574_v24, %v453_v16  ;;  %v1321_v28 = vpop.eup %1320  ;;  %v708_v33 = vsel %vm707_vm5, %v1972_v53, %v704_v25  ;;  %v784_v39 = vand.u32 2147483647, %v1929_v31  ;;  %1330 = vrcp.f32 %v2010_v22  ;;  %vm782_vm8 = vmor %vm780_vm4, %vm781_vm6 }
 0x187   : > { %v2023_v32 = vpop.eup %1322  ;;  %v2029_v41 = vadd.f32 1.0, %v1321_v28  ;;  %v713_v42 = vsel %vm2013_vm3, %v712_v29, %v708_v33  ;;  %v762_v43 = vsub.f32 1.0, %v761_v17  ;;  %v779_v46 = vadd.f32 %v1983_v2, %v778_v37 }
 0x188   : > { %v1216_v35 = vmul.f32 -1.442695, %v590_v26  ;;  %v1325_v40 = vpop.eup %1324  ;;  %912 = vperm.xlu2 %1275, %v713_v42   ;;  %v787_v47 = vor.u32 1.1754944e-38, %v786_v30  ;;  %vm766_vm7 = vweird.f32 %v1993_v57  ;;  %v769_v50 = vand.u32 2147483647, %v1945_v34 }
 0x189   : > { %v2033_v36 = vpop.eup %1326  ;;  %v2035_v44 = vadd.f32 1.0, %v1325_v40  ;;  %v763_v49 = vmul.f32 %v1993_v57, %v762_v43  ;;  %v771_v51 = vand.u32 2147483648, %v1945_v34  ;;  %v783_v52 = vsel %vm782_vm8, %v1983_v2, %v779_v46 }
 0x18a   : > { %v1329_v48 = vpop.eup %1328  ;;  %1332 = vpow2.f32 %v1216_v35  ;;  %vm785_vm9 = vcmp.eq.f32.partialorder %v784_v39, 8.507059e+37  ;;  %vm765_vm10 = vweird.f32 %v1945_v34  ;;  %v716_v53 = vmul.f32 %v1976_v60, %v1913_v12  ;;  %v1348_v39 = vld [vmem:[%s1631_s25 + $0x70] sm:$0xff] }
 0x18b   : > { %1334 = vrcp.f32 %v2029_v41  ;;  %v2051_v54 = vadd.f32 1.0, %v1329_v48  ;;  %v788_v31 = vsel %vm785_vm9, %v787_v47, %v783_v52  ;;  %v764_v55 = vadd.f32 %v1993_v57, %v763_v49  ;;  %vm767_vm11 = vmor %vm765_vm10, %vm766_vm7  ;;  %v1351_v49 = vld [vmem:[%s1631_s25 + $0x20] sm:$0xff] }
 0x18c   : > { %1336 = vrcp.f32 %v2035_v44  ;;  %937 = vperm.xlu0 %1276, %v788_v31   ;;  %v772_v56 = vor.u32 1.1754944e-38, %v771_v51  ;;  %v717_v58 = vsub.f32 1.0, %v716_v53  ;;  %v2057_v59 = vpop.eup %1330  ;;  %vm770_vm12 = vcmp.eq.f32.partialorder %v769_v50, 8.507059e+37 }
 0x18d   : > { %v768_v34 = vsel %vm767_vm11, %v1993_v57, %v764_v55  ;;  %v726_v38 = vand.u32 2147483648, %v1913_v12  ;;  %v821_v61 = vmul.f32 %v2023_v32, %v1985_v3  ;;  %vm721_vm13 = vweird.f32 %v1976_v60 }
 0x18e   : > { %v773_v62 = vsel %vm770_vm12, %v772_v56, %v768_v34  ;;  %v718_v63 = vmul.f32 %v1976_v60, %v717_v58  ;;  %v724_v0 = vand.u32 2147483647, %v1913_v12  ;;  %1338 = vrcp.f32 %v2051_v54 }
 0x18f   : > { %932 = vperm.xlu1 %1277, %v773_v62   ;;  %vm720_vm14 = vweird.f32 %v1913_v12  ;;  %v822_v2 = vsub.f32 1.0, %v821_v61  ;;  %v829_v4 = vand.u32 2147483647, %v1985_v3  ;;  %vm825_vm15 = vweird.f32 %v1985_v3 }
 0x190   : > { %v1333_v1 = vpop.eup %1332  ;;  %v719_v5 = vadd.f32 %v1976_v60, %v718_v63  ;;  %v831_v6 = vand.u32 2147483648, %v1985_v3  ;;  %v806_v7 = vmul.f32 %v2033_v36, %v1996_v10  ;;  %vm722_vm0 = vmor %vm720_vm14, %vm721_vm13  ;;  %v727_v57 = vor.u32 1.1754944e-38, %v726_v38 }
 0x191   : > { %v2074_v8 = vpop.eup %1334  ;;  %v2076_v9 = vadd.f32 1.0, %v1333_v1  ;;  %v823_v12 = vmul.f32 %v2023_v32, %v822_v2  ;;  %vm826_vm1 = vweird.f32 %v2023_v32  ;;  %vm725_vm2 = vcmp.eq.f32.partialorder %v724_v0, 8.507059e+37 }
 0x192   : > { %v2080_v11 = vpop.eup %1336  ;;  %v723_v13 = vsel %vm722_vm0, %v1976_v60, %v719_v5  ;;  %vm2083_vm3 = vcmp.eq.f32.partialorder %v829_v4, 8.507059e+37  ;;  %v807_v15 = vsub.f32 1.0, %v806_v7  ;;  %vm811_vm4 = vweird.f32 %v2033_v36  ;;  %vm827_vm5 = vmor %vm825_vm15, %vm826_vm1 }
 0x193   : > { %v728_v16 = vsel %vm725_vm2, %v727_v57, %v723_v13  ;;  %v824_v18 = vadd.f32 %v2023_v32, %v823_v12  ;;  %v816_v19 = vand.u32 2147483648, %v1996_v10  ;;  %v832_v20 = vor.u32 1.1754944e-38, %v831_v6 }
 0x194   : > { %917 = vperm.xlu2 %1275, %v728_v16   ;;  %v808_v60 = vmul.f32 %v2033_v36, %v807_v15  ;;  %v814_v23 = vand.u32 2147483647, %v1996_v10  ;;  %v746_v24 = vmul.f32 %v2008_v21, %v1956_v45  ;;  %v2096_v25 = vpop.eup %1338  ;;  %1340 = vrcp.f32 %v2076_v9 }
 0x195   : > { %v828_v26 = vsel %vm827_vm5, %v2023_v32, %v824_v18  ;;  %vm810_vm6 = vweird.f32 %v1996_v10  ;;  %v754_v27 = vand.u32 2147483647, %v1956_v45  ;;  %vm750_vm7 = vweird.f32 %v1956_v45 }
 0x196   : > { %v833_v3 = vsel %vm2083_vm3, %v832_v20, %v828_v26  ;;  %v809_v28 = vadd.f32 %v2033_v36, %v808_v60  ;;  %v747_v29 = vsub.f32 1.0, %v746_v24  ;;  %vm812_vm8 = vmor %vm810_vm6, %vm811_vm4  ;;  %v817_v30 = vor.u32 1.1754944e-38, %v816_v19  ;;  %v1342_v26 = vld [vmem:[%s1631_s25] sm:$0xff] }
 0x197   : > { %952 = vperm.xlu0 %1276, %v833_v3   ;;  %vm751_vm9 = vweird.f32 %v2008_v21  ;;  %v756_v17 = vand.u32 2147483648, %v1956_v45  ;;  %v866_v10 = vmul.f32 %v2074_v8, %v2029_v41  ;;  %vm815_vm10 = vcmp.eq.f32.partialorder %v814_v23, 8.507059e+37  ;;  %v1343_v3 = vld [vmem:[%s1631_s25 + $0x8] sm:$0xff] }
 0x198   : > { %v813_v32 = vsel %vm812_vm8, %v2033_v36, %v809_v28  ;;  %v748_v33 = vmul.f32 %v2008_v21, %v747_v29  ;;  %v874_v35 = vand.u32 2147483647, %v2029_v41  ;;  %vm2115_vm11 = vcmp.eq.f32.partialorder %v754_v27, 8.507059e+37  ;;  %vm752_vm14 = vmor %vm750_vm7, %vm751_vm9  ;;  %v1344_v29 = vld [vmem:[%s1631_s25 + $0x10] sm:$0xff] }
 0x199   : > { %v818_v37 = vsel %vm815_vm10, %v817_v30, %v813_v32  ;;  %v867_v40 = vsub.f32 1.0, %v866_v10  ;;  %v851_v42 = vmul.f32 %v2080_v11, %v2035_v44  ;;  %vm870_vm12 = vweird.f32 %v2029_v41  ;;  %v1346_v32 = vld [vmem:[%s1631_s25 + $0x60] sm:$0xff] }
 0x19a   : > { %947 = vperm.xlu1 %1277, %v818_v37   ;;  %v749_v43 = vadd.f32 %v2008_v21, %v748_v33  ;;  %vm871_vm13 = vweird.f32 %v2074_v8  ;;  %v876_v36 = vand.u32 2147483648, %v2029_v41  ;;  %v2125_v46 = vpop.eup %1340  ;;  %v757_v47 = vor.u32 1.1754944e-38, %v756_v17 }
 0x19b   : > { %v868_v48 = vmul.f32 %v2074_v8, %v867_v40  ;;  %vm2132_vm15 = vcmp.eq.f32.partialorder %v874_v35, 8.507059e+37  ;;  %v852_v50 = vsub.f32 1.0, %v851_v42  ;;  %vm856_vm0 = vweird.f32 %v2080_v11  ;;  %vm872_vm1 = vmor %vm870_vm12, %vm871_vm13  ;;  %v1347_v35 = vld [vmem:[%s1631_s25 + $0x68] sm:$0xff]  ;;  %v1349_v42 = vld [vmem:[%s1631_s25 + $0x78] sm:$0xff] }
 0x19c   : > { %v753_v51 = vsel %vm752_vm14, %v2008_v21, %v749_v43  ;;  %v861_v52 = vand.u32 2147483648, %v2035_v44  ;;  %v791_v53 = vmul.f32 %v2057_v59, %v2010_v22  ;;  %v859_v56 = vand.u32 2147483647, %v2035_v44 }
 0x19d   : > { %v758_v45 = vsel %vm2115_vm11, %v757_v47, %v753_v51  ;;  %v869_v31 = vadd.f32 %v2074_v8, %v868_v48  ;;  %v853_v55 = vmul.f32 %v2080_v11, %v852_v50  ;;  %v877_v21 = vor.u32 1.1754944e-38, %v876_v36  ;;  %v1350_v47 = vld [vmem:[%s1631_s25 + $0x40] sm:$0xff]  ;;  %v1352_v51 = vld [vmem:[%s1631_s25 + $0x28] sm:$0xff] }
 0x19e   : > { %927 = vperm.xlu2 %1275, %v758_v45   ;;  %vm855_vm2 = vweird.f32 %v2035_v44  ;;  %v862_v58 = vor.u32 1.1754944e-38, %v861_v52  ;;  %v792_v34 = vsub.f32 1.0, %v791_v53  ;;  %v801_v62 = vand.u32 2147483648, %v2010_v22  ;;  %v1353_v45 = vld [vmem:[%s1631_s25 + $0x80] sm:$0xff] }
 0x19f   : > { %v873_v38 = vsel %vm872_vm1, %v2074_v8, %v869_v31  ;;  %v854_v61 = vadd.f32 %v2080_v11, %v853_v55  ;;  %v836_v63 = vmul.f32 %v2096_v25, %v2051_v54  ;;  %vm857_vm3 = vmor %vm855_vm2, %vm856_vm0  ;;  %vm796_vm4 = vweird.f32 %v2057_v59  ;;  %v1354_v55 = vld [vmem:[%s1631_s25 + $0x88] sm:$0xff] }
 0x1a0   : > { %v878_v0 = vsel %vm2132_vm15, %v877_v21, %v873_v38  ;;  %v793_v41 = vmul.f32 %v2057_v59, %v792_v34  ;;  %v799_v44 = vand.u32 2147483647, %v2010_v22  ;;  %vm860_vm5 = vcmp.eq.f32.partialorder %v859_v56, 8.507059e+37  ;;  %v1355_v21 = vld [vmem:[%s1631_s25 + $0x90] sm:$0xff]  ;;  %v1356_v34 = vld [vmem:[%s1631_s25 + $0x98] sm:$0xff] }
 0x1a1   : > { %967 = vperm.xlu0 %1276, %v878_v0   ;;  %v858_v1 = vsel %vm857_vm3, %v2080_v11, %v854_v61  ;;  %v837_v2 = vsub.f32 1.0, %v836_v63  ;;  %vm795_vm6 = vweird.f32 %v2010_v22  ;;  %v802_v6 = vor.u32 1.1754944e-38, %v801_v62  ;;  %v1357_v61 = vld [vmem:[%s1631_s25 + $0x30] sm:$0xff]  ;;  %v1358_v63 = vld [vmem:[%s1631_s25 + $0x38] sm:$0xff] }
 0x1a2   : > { %v863_v4 = vsel %vm860_vm5, %v862_v58, %v858_v1  ;;  %v794_v5 = vadd.f32 %v2057_v59, %v793_v41  ;;  %vm797_vm7 = vmor %vm795_vm6, %vm796_vm4  ;;  %v881_v8 = vmul.f32 %v2125_v46, %v2076_v9  ;;  %vm800_vm8 = vcmp.eq.f32.partialorder %v799_v44, 8.507059e+37  ;;  %v1359_v41 = vld [vmem:[%s1631_s25 + $0x48] sm:$0xff]  ;;  %v1360_v1 = vld [vmem:[%s1631_s25 + $0x50] sm:$0xff] }
 0x1a3   : > { %962 = vperm.xlu1 %1277, %v863_v4   ;;  %v838_v7 = vmul.f32 %v2096_v25, %v837_v2  ;;  %vm841_vm9 = vweird.f32 %v2096_v25  ;;  %v846_v22 = vand.u32 2147483648, %v2051_v54  ;;  %vm840_vm10 = vweird.f32 %v2051_v54 }
 0x1a4   : > { %v798_v57 = vsel %vm797_vm7, %v2057_v59, %v794_v5  ;;  %v882_v13 = vsub.f32 1.0, %v881_v8  ;;  %v844_v14 = vand.u32 2147483647, %v2051_v54  ;;  %vm842_vm11 = vmor %vm840_vm10, %vm841_vm9  ;;  %vm886_vm13 = vweird.f32 %v2125_v46  ;;  %v1361_v5 = vld [vmem:[%s1631_s25 + $0x58] sm:$0xff] }
 0x1a5   : > { %v803_v12 = vsel %vm800_vm8, %v802_v6, %v798_v57  ;;  %v839_v11 = vadd.f32 %v2096_v25, %v838_v7  ;;  %v847_v59 = vor.u32 1.1754944e-38, %v846_v22  ;;  %v891_v20 = vand.u32 2147483648, %v2076_v9  ;;  %v1362_v7 = vld [vmem:[%s1631_s25 + $0xa0] sm:$0xff] }
 0x1a6   : > { %942 = vperm.xlu2 %1275, %v803_v12   ;;  %v883_v16 = vmul.f32 %v2125_v46, %v882_v13  ;;  %vm845_vm12 = vcmp.eq.f32.partialorder %v844_v14, 8.507059e+37  ;;  %vm885_vm14 = vweird.f32 %v2076_v9  ;;  %v889_v54 = vand.u32 2147483647, %v2076_v9  ;;  %v1345_v9 = vld [vmem:[%s1631_s25 + $0x18] sm:$0xff]  ;;  %v1363_v12 = vld [vmem:[%s1631_s25 + $0xc0] sm:$0xff]  ;;  %v1364_v13 = vld [vmem:[%s1631_s25 + $0xc8] sm:$0xff] }
 0x1a7   : > { %v843_v15 = vsel %vm842_vm11, %v2096_v25, %v839_v11  ;;  %vm887_vm15 = vmor %vm885_vm14, %vm886_vm13  ;;  %v892_v23 = vor.u32 1.1754944e-38, %v891_v20  ;;  %v1365_v14 = vld [vmem:[%s1631_s25 + $0xd0] sm:$0xff] }
 0x1a8   : > { %v848_v18 = vsel %vm845_vm12, %v847_v59, %v843_v15  ;;  %v884_v19 = vadd.f32 %v2125_v46, %v883_v16  ;;  %vm890_vm0 = vcmp.eq.f32.partialorder %v889_v54, 8.507059e+37  ;;  %v1366_v16 = vld [vmem:[%s1631_s25 + $0xd8] sm:$0xff]  ;;  %v1368_v20 = vld [vmem:[%s1631_s25 + $0xb0] sm:$0xff] }
 0x1aa   : > { %v888_v60 = vsel %vm887_vm15, %v2125_v46, %v884_v19 }
 0x1ab   : > { %v893_v24 = vsel %vm890_vm0, %v892_v23, %v888_v60  ;;  %v1369_v60 = vld [vmem:[%s1631_s25 + $0xb8] sm:$0xff] }
 0x1ae   : > { %957 = vperm.xlu2 %1275, %v848_v18   ;;  %v1367_v18 = vld [vmem:[%s1631_s25 + $0xa8] sm:$0xff] }
 0x1b6   : > { %972 = vperm.xlu2 %1275, %v893_v24  }
 0x1d8   : > { %v898_v25 = vpop.permute.xlu2 %897 }
 0x1d9   : > { %v975_v27 = vmul.f32 %v1342_v26, %v898_v25  ;;  %v976_v28 = vmul.f32 %v1343_v3, %v898_v25  ;;  %v977_v30 = vmul.f32 %v1344_v29, %v898_v25  ;;  %v978_v17 = vmul.f32 %v1345_v9, %v898_v25  ;;  %v1370_v25 = vld [vmem:[%s1631_s25 + $0x100] sm:$0xff]  ;;  %v1372_v29 = vld [vmem:[%s1631_s25 + $0x128] sm:$0xff]  ;;  %v1373_v9 = vld [vmem:[%s1631_s25 + $0x130] sm:$0xff] }
 0x1da   : > { %v1371_v3 = vld [vmem:[%s1631_s25 + $0x120] sm:$0xff] }
 0x1db   : > { %1039 = vst [vmem:[%s2189_s28] sm:$0xff] %v975_v27 }
 0x1dc   : > { %1040 = vst [vmem:[%s2189_s28 + $0x8] sm:$0xff] %v976_v28 }
 0x1dd   : > { %1041 = vst [vmem:[%s2189_s28 + $0x10] sm:$0xff] %v977_v30 }
 0x1de   : > { %1042 = vst [vmem:[%s2189_s28 + $0x18] sm:$0xff] %v978_v17 }
 0x1e2   : > { %v913_v10 = vpop.permute.xlu2 %912 }
 0x1e3   : > { %v987_v33 = vmul.f32 %v1346_v32, %v913_v10  ;;  %v988_v37 = vmul.f32 %v1347_v35, %v913_v10  ;;  %v989_v40 = vmul.f32 %v1348_v39, %v913_v10  ;;  %v990_v43 = vmul.f32 %v1349_v42, %v913_v10  ;;  %v1374_v10 = vld [vmem:[%s1631_s25 + $0x138] sm:$0xff]  ;;  %v1376_v39 = vld [vmem:[%s1631_s25 + $0x110] sm:$0xff] }
 0x1e4   : > { %v1377_v42 = vld [vmem:[%s1631_s25 + $0x118] sm:$0xff] }
 0x1e5   : > { %1051 = vst [vmem:[%s2189_s28 + $0x60] sm:$0xff] %v987_v33  ;;  %v1375_v33 = vld [vmem:[%s1631_s25 + $0x108] sm:$0xff] }
 0x1e6   : > { %1052 = vst [vmem:[%s2189_s28 + $0x68] sm:$0xff] %v988_v37 }
 0x1e7   : > { %1053 = vst [vmem:[%s2189_s28 + $0x70] sm:$0xff] %v989_v40 }
 0x1e8   : > { %1054 = vst [vmem:[%s2189_s28 + $0x78] sm:$0xff] %v990_v43 }
 0x1ec   : > { %v908_v36 = vpop.permute.xlu1 %907 }
 0x1ed   : > { %v903_v46 = vpop.permute.xlu0 %902  ;;  %v983_v48 = vmul.f32 %v1350_v47, %v908_v36  ;;  %v984_v44 = vmul.f32 %v1359_v41, %v908_v36  ;;  %v985_v2 = vmul.f32 %v1360_v1, %v908_v36  ;;  %v986_v6 = vmul.f32 %v1361_v5, %v908_v36  ;;  %v1378_v36 = vld [vmem:[%s1631_s25 + $0xe0] sm:$0xff] }
 0x1ee   : > { %v979_v50 = vmul.f32 %v1351_v49, %v903_v46  ;;  %v980_v52 = vmul.f32 %v1352_v51, %v903_v46  ;;  %v918_v53 = vpop.permute.xlu2 %917  ;;  %v981_v62 = vmul.f32 %v1357_v61, %v903_v46  ;;  %v982_v0 = vmul.f32 %v1358_v63, %v903_v46 }
 0x1ef   : > { %1047 = vst [vmem:[%s2189_s28 + $0x40] sm:$0xff] %v983_v48  ;;  %v991_v31 = vmul.f32 %v1353_v45, %v918_v53  ;;  %v992_v56 = vmul.f32 %v1354_v55, %v918_v53  ;;  %v993_v58 = vmul.f32 %v1355_v21, %v918_v53  ;;  %v994_v38 = vmul.f32 %v1356_v34, %v918_v53  ;;  %v1379_v48 = vld [vmem:[%s1631_s25 + $0x180] sm:$0xff]  ;;  %v1382_v45 = vld [vmem:[%s1631_s25 + $0x198] sm:$0xff]  ;;  %v1383_v55 = vld [vmem:[%s1631_s25 + $0xe8] sm:$0xff] }
 0x1f0   : > { %1043 = vst [vmem:[%s2189_s28 + $0x20] sm:$0xff] %v979_v50  ;;  %v1380_v50 = vld [vmem:[%s1631_s25 + $0x188] sm:$0xff] }
 0x1f1   : > { %1044 = vst [vmem:[%s2189_s28 + $0x28] sm:$0xff] %v980_v52  ;;  %v1381_v52 = vld [vmem:[%s1631_s25 + $0x190] sm:$0xff] }
 0x1f2   : > { %1055 = vst [vmem:[%s2189_s28 + $0x80] sm:$0xff] %v991_v31 }
 0x1f3   : > { %1056 = vst [vmem:[%s2189_s28 + $0x88] sm:$0xff] %v992_v56 }
 0x1f4   : > { %1057 = vst [vmem:[%s2189_s28 + $0x90] sm:$0xff] %v993_v58  ;;  %v1384_v58 = vld [vmem:[%s1631_s25 + $0xf0] sm:$0xff] }
 0x1f5   : > { %1058 = vst [vmem:[%s2189_s28 + $0x98] sm:$0xff] %v994_v38  ;;  %v923_v4 = vpop.permute.xlu1 %922  ;;  %v1385_v38 = vld [vmem:[%s1631_s25 + $0xf8] sm:$0xff] }
 0x1f6   : > { %1045 = vst [vmem:[%s2189_s28 + $0x30] sm:$0xff] %v981_v62  ;;  %v995_v8 = vmul.f32 %v1362_v7, %v923_v4  ;;  %v996_v19 = vmul.f32 %v1367_v18, %v923_v4  ;;  %v997_v54 = vmul.f32 %v1368_v20, %v923_v4  ;;  %v998_v23 = vmul.f32 %v1369_v60, %v923_v4  ;;  %v1386_v62 = vld [vmem:[%s1631_s25 + $0x160] sm:$0xff]  ;;  %v1389_v4 = vld [vmem:[%s1631_s25 + $0x178] sm:$0xff]  ;;  %v1396_v20 = vld [vmem:[%s1631_s25 + $0x150] sm:$0xff] }
 0x1f7   : > { %1046 = vst [vmem:[%s2189_s28 + $0x38] sm:$0xff] %v982_v0  ;;  %v1387_v0 = vld [vmem:[%s1631_s25 + $0x168] sm:$0xff]  ;;  %v1390_v7 = vld [vmem:[%s1631_s25 + $0x1e0] sm:$0xff]  ;;  %v1397_v60 = vld [vmem:[%s1631_s25 + $0x158] sm:$0xff] }
 0x1f8   : > { %1048 = vst [vmem:[%s2189_s28 + $0x48] sm:$0xff] %v984_v44  ;;  %v928_v57 = vpop.permute.xlu2 %927  ;;  %v1388_v44 = vld [vmem:[%s1631_s25 + $0x170] sm:$0xff] }
 0x1f9   : > { %1049 = vst [vmem:[%s2189_s28 + $0x50] sm:$0xff] %v985_v2  ;;  %v999_v11 = vmul.f32 %v1363_v12, %v928_v57  ;;  %v1000_v22 = vmul.f32 %v1364_v13, %v928_v57  ;;  %v1001_v15 = vmul.f32 %v1365_v14, %v928_v57  ;;  %v1002_v59 = vmul.f32 %v1366_v16, %v928_v57  ;;  %v1391_v57 = vld [vmem:[%s1631_s25 + $0x1e8] sm:$0xff] }
 0x1fa   : > { %1050 = vst [vmem:[%s2189_s28 + $0x58] sm:$0xff] %v986_v6 }
 0x1fb   : > { %1059 = vst [vmem:[%s2189_s28 + $0xa0] sm:$0xff] %v995_v8 }
 0x1fc   : > { %1063 = vst [vmem:[%s2189_s28 + $0xc0] sm:$0xff] %v999_v11  ;;  %v1392_v11 = vld [vmem:[%s1631_s25 + $0x1f0] sm:$0xff] }
 0x1fd   : > { %1064 = vst [vmem:[%s2189_s28 + $0xc8] sm:$0xff] %v1000_v22  ;;  %v1393_v22 = vld [vmem:[%s1631_s25 + $0x1f8] sm:$0xff] }
 0x1fe   : > { %1065 = vst [vmem:[%s2189_s28 + $0xd0] sm:$0xff] %v1001_v15  ;;  %v938_v24 = vpop.permute.xlu0 %937  ;;  %v1394_v15 = vld [vmem:[%s1631_s25 + $0x140] sm:$0xff] }
 0x1ff   : > { %1066 = vst [vmem:[%s2189_s28 + $0xd8] sm:$0xff] %v1002_v59  ;;  %v1007_v26 = vmul.f32 %v1370_v25, %v938_v24  ;;  %v1008_v35 = vmul.f32 %v1375_v33, %v938_v24  ;;  %v1009_v40 = vmul.f32 %v1376_v39, %v938_v24  ;;  %v1010_v43 = vmul.f32 %v1377_v42, %v938_v24  ;;  %v1395_v59 = vld [vmem:[%s1631_s25 + $0x148] sm:$0xff]  ;;  %v1398_v24 = vld [vmem:[%s1631_s25 + $0x1c0] sm:$0xff]  ;;  %v1405_v39 = vld [vmem:[%s1631_s25 + $0x1b8] sm:$0xff] }
 0x200   : > { %1060 = vst [vmem:[%s2189_s28 + $0xa8] sm:$0xff] %v996_v19  ;;  %v943_v27 = vpop.permute.xlu2 %942 }
 0x201   : > { %1061 = vst [vmem:[%s2189_s28 + $0xb0] sm:$0xff] %v997_v54  ;;  %v1011_v28 = vmul.f32 %v1371_v3, %v943_v27  ;;  %v1012_v30 = vmul.f32 %v1372_v29, %v943_v27  ;;  %v1013_v17 = vmul.f32 %v1373_v9, %v943_v27  ;;  %v1014_v32 = vmul.f32 %v1374_v10, %v943_v27  ;;  %v933_v37 = vpop.permute.xlu1 %932 }
 0x202   : > { %1062 = vst [vmem:[%s2189_s28 + $0xb8] sm:$0xff] %v998_v23  ;;  %v1003_v46 = vmul.f32 %v1378_v36, %v933_v37  ;;  %v1004_v56 = vmul.f32 %v1383_v55, %v933_v37  ;;  %v1005_v34 = vmul.f32 %v1384_v58, %v933_v37  ;;  %v1006_v61 = vmul.f32 %v1385_v38, %v933_v37 }
 0x203   : > { %1071 = vst [vmem:[%s2189_s28 + $0x100] sm:$0xff] %v1007_v26  ;;  %v1399_v26 = vld [vmem:[%s1631_s25 + $0x1c8] sm:$0xff] }
 0x204   : > { %1075 = vst [vmem:[%s2189_s28 + $0x120] sm:$0xff] %v1011_v28  ;;  %v1400_v28 = vld [vmem:[%s1631_s25 + $0x1d0] sm:$0xff] }
 0x205   : > { %1076 = vst [vmem:[%s2189_s28 + $0x128] sm:$0xff] %v1012_v30  ;;  %v1401_v30 = vld [vmem:[%s1631_s25 + $0x1d8] sm:$0xff] }
 0x206   : > { %1077 = vst [vmem:[%s2189_s28 + $0x130] sm:$0xff] %v1013_v17  ;;  %v1402_v17 = vld [vmem:[%s1631_s25 + $0x1a0] sm:$0xff] }
 0x207   : > { %1078 = vst [vmem:[%s2189_s28 + $0x138] sm:$0xff] %v1014_v32  ;;  %v1403_v32 = vld [vmem:[%s1631_s25 + $0x1a8] sm:$0xff] }
 0x208   : > { %1072 = vst [vmem:[%s2189_s28 + $0x108] sm:$0xff] %v1008_v35  ;;  %v958_v47 = vpop.permute.xlu2 %957  ;;  %v1404_v35 = vld [vmem:[%s1631_s25 + $0x1b0] sm:$0xff] }
 0x209   : > { %1073 = vst [vmem:[%s2189_s28 + $0x110] sm:$0xff] %v1009_v40  ;;  %v1023_v49 = vmul.f32 %v1379_v48, %v958_v47  ;;  %v1024_v51 = vmul.f32 %v1380_v50, %v958_v47  ;;  %v1025_v53 = vmul.f32 %v1381_v52, %v958_v47  ;;  %v1026_v31 = vmul.f32 %v1382_v45, %v958_v47  ;;  %v953_v21 = vpop.permute.xlu0 %952 }
 0x20a   : > { %1074 = vst [vmem:[%s2189_s28 + $0x118] sm:$0xff] %v1010_v43  ;;  %v1019_v63 = vmul.f32 %v1386_v62, %v953_v21  ;;  %v1020_v41 = vmul.f32 %v1387_v0, %v953_v21  ;;  %v1021_v1 = vmul.f32 %v1388_v44, %v953_v21  ;;  %v1022_v5 = vmul.f32 %v1389_v4, %v953_v21 }
 0x20b   : > { %1067 = vst [vmem:[%s2189_s28 + $0xe0] sm:$0xff] %v1003_v46 }
 0x20c   : > { %1087 = vst [vmem:[%s2189_s28 + $0x180] sm:$0xff] %v1023_v49  ;;  %v948_v6 = vpop.permute.xlu1 %947 }
 0x20d   : > { %1088 = vst [vmem:[%s2189_s28 + $0x188] sm:$0xff] %v1024_v51  ;;  %v1015_v16 = vmul.f32 %v1394_v15, %v948_v6  ;;  %v1016_v18 = vmul.f32 %v1395_v59, %v948_v6  ;;  %v1017_v54 = vmul.f32 %v1396_v20, %v948_v6  ;;  %v1018_v23 = vmul.f32 %v1397_v60, %v948_v6 }
 0x20e   : > { %1089 = vst [vmem:[%s2189_s28 + $0x190] sm:$0xff] %v1025_v53 }
 0x20f   : > { %1090 = vst [vmem:[%s2189_s28 + $0x198] sm:$0xff] %v1026_v31 }
 0x210   : > { %1068 = vst [vmem:[%s2189_s28 + $0xe8] sm:$0xff] %v1004_v56  ;;  %v973_v2 = vpop.permute.xlu2 %972 }
 0x211   : > { %1069 = vst [vmem:[%s2189_s28 + $0xf0] sm:$0xff] %v1005_v34  ;;  %v1035_v8 = vmul.f32 %v1390_v7, %v973_v2  ;;  %v1036_v12 = vmul.f32 %v1391_v57, %v973_v2  ;;  %v1037_v13 = vmul.f32 %v1392_v11, %v973_v2  ;;  %v1038_v14 = vmul.f32 %v1393_v22, %v973_v2 }
 0x212   : > { %1070 = vst [vmem:[%s2189_s28 + $0xf8] sm:$0xff] %v1006_v61 }
 0x213   : > { %1083 = vst [vmem:[%s2189_s28 + $0x160] sm:$0xff] %v1019_v63  ;;  %v968_v19 = vpop.permute.xlu0 %967 }
 0x214   : > { %1084 = vst [vmem:[%s2189_s28 + $0x168] sm:$0xff] %v1020_v41  ;;  %v1031_v25 = vmul.f32 %v1398_v24, %v968_v19  ;;  %v1032_v27 = vmul.f32 %v1399_v26, %v968_v19  ;;  %v1033_v29 = vmul.f32 %v1400_v28, %v968_v19  ;;  %v1034_v9 = vmul.f32 %v1401_v30, %v968_v19 }
 0x215   : > { %1085 = vst [vmem:[%s2189_s28 + $0x170] sm:$0xff] %v1021_v1  ;;  %v963_v3 = vpop.permute.xlu1 %962 }
 0x216   : > { %1086 = vst [vmem:[%s2189_s28 + $0x178] sm:$0xff] %v1022_v5  ;;  %v1027_v10 = vmul.f32 %v1402_v17, %v963_v3  ;;  %v1028_v33 = vmul.f32 %v1403_v32, %v963_v3  ;;  %v1029_v37 = vmul.f32 %v1404_v35, %v963_v3  ;;  %v1030_v40 = vmul.f32 %v1405_v39, %v963_v3 }
 0x217   : > { %1099 = vst [vmem:[%s2189_s28 + $0x1e0] sm:$0xff] %v1035_v8 }
 0x218   : > { %1100 = vst [vmem:[%s2189_s28 + $0x1e8] sm:$0xff] %v1036_v12 }
 0x219   : > { %1101 = vst [vmem:[%s2189_s28 + $0x1f0] sm:$0xff] %v1037_v13 }
 0x21a   : > { %1102 = vst [vmem:[%s2189_s28 + $0x1f8] sm:$0xff] %v1038_v14 }
 0x21b   : > { %1079 = vst [vmem:[%s2189_s28 + $0x140] sm:$0xff] %v1015_v16 }
 0x21c   : > { %1080 = vst [vmem:[%s2189_s28 + $0x148] sm:$0xff] %v1016_v18 }
 0x21d   : > { %1081 = vst [vmem:[%s2189_s28 + $0x150] sm:$0xff] %v1017_v54 }
 0x21e   : > { %1082 = vst [vmem:[%s2189_s28 + $0x158] sm:$0xff] %v1018_v23 }
 0x21f   : > { %1095 = vst [vmem:[%s2189_s28 + $0x1c0] sm:$0xff] %v1031_v25 }
 0x220   : > { %1096 = vst [vmem:[%s2189_s28 + $0x1c8] sm:$0xff] %v1032_v27 }
 0x221   : > { %1097 = vst [vmem:[%s2189_s28 + $0x1d0] sm:$0xff] %v1033_v29 }
 0x222   : > { %1098 = vst [vmem:[%s2189_s28 + $0x1d8] sm:$0xff] %v1034_v9 }
 0x223   : > { %1091 = vst [vmem:[%s2189_s28 + $0x1a0] sm:$0xff] %v1027_v10 }
 0x224   : > { %1092 = vst [vmem:[%s2189_s28 + $0x1a8] sm:$0xff] %v1028_v33 }
 0x225   : > { %1093 = vst [vmem:[%s2189_s28 + $0x1b0] sm:$0xff] %v1029_v37 }
 0x226   : > { %1094 = vst [vmem:[%s2189_s28 + $0x1b8] sm:$0xff] %v1030_v40 }
 0x227   : > { %1463 = shalt.err (!%p1460_p4)
}
 0x228   : > { %s1507_s12 = smov 512   ;;  %s1508_s8 = smov 32  }
 0x229   : > { %1226 = dma.vmem_to_hbm [thread:$0]  (%p1589_p11), %s1117_s7, 8192, %s1119_s11, %s1104_s23, %s1507_s12, %s1507_s12, %s1508_s8  }
 0x22a PF: > { %s1133_s28 = sand.u32 1, %s1490_s18   ;;  %p2374_p7 = scmp.ge.s32.totalorder %s1502_s21, 2 }
 0x22b   : > { %s1134_s14 = scalar_lea.sflag [#allocation4], %s1133_s28 }
 0x22c   : > { %p1233_p5 = pnand %p2374_p7, %p1593_p12 }
 0x22e   : > { %p1234_p8 = pneg %p1233_p5 }
 0x230   : > { %1485 = dma.done.wait (%p1234_p8), %s1134_s14, 8192  }
 0x231   : > { %1487 = vsyncadd (%p1234_p8), %s1134_s14, 4294959104  ;;  %p18_p10 = scmp.ge.s32.totalorder %s1564_s24, 4   ;;  %s2375_s18 = smov %s1494_s19 }
 0x232   : > { %s2376_s19 = smov %s1498_s20  ;;  %s2377_s20 = smov %s1576_s27 }
 0x233   : > { %s2378_s21 = smov %s1564_s24  ;;  %20 = sbr.rel (!%p18_p10) target bundleno = 5 (0x5), region = 85 }
 0x238   :  { %1140 = vsyncpa [#allocation3], 1 }
 0x239   :  { %1142 = vsyncpa [#allocation3 + $0x1], 1 }
 0x23a   :  { %1143 = vsyncpa [#allocation4], 1 }
 0x23b   :  { %1145 = vsyncpa [#allocation4 + $0x1], 1 }

</bundles_post_ra>
